<compile_context>
chip_gen: v7x
topology: tpu7x:2x2x1
jax: 0.10.0
libtpu: 0.0.40
codegen_flags: <defaults>
</compile_context>

<pallas_src>
import jax
import jax.numpy as jnp
from jax.experimental import pallas as pl
from jax.experimental.pallas import tpu as pltpu

# ---- small synthetic CLIP-text config ----
VOCAB = 64       # vocab size (EOT token = VOCAB-1, the highest id)
B = 2            # batch
CTX = 8          # context length
D = 32           # transformer width
H = 4            # attention heads
DH = D // H      # head dim
LAYERS = 2       # transformer layers
EMBED = 16       # output text-embedding dim
EMBED_PAD = 128  # lane-dense output store; sliced back to EMBED wrapper-side
EPS = 1e-5       # LayerNorm eps (PyTorch default)


def _layernorm(x, w, b):
    mu = jnp.mean(x, axis=-1, keepdims=True)
    var = jnp.mean((x - mu) ** 2, axis=-1, keepdims=True)
    return (x - mu) * jax.lax.rsqrt(var + EPS) * w + b


def _clip_text_kernel(idx_ref,    # SMEM (B,) int32: EOT position per batch row
                      x0_ref,     # (CTX, D)   tok-emb + pos for batch b
                      wqkv_ref,   # (D, 3D)    layer-l qkv weight
                      wout_ref,   # (D, D)     layer-l out-proj weight
                      wfc1_ref,   # (D, 4D)
                      wfc2_ref,   # (4D, D)
                      misc_ref,   # (8, 4D)    packed LN params + biases, layer l
                      lnf_ref,    # (2, D)     [lnf_w; lnf_b]
                      proj_ref,   # (D, EMBED_PAD)
                      o_ref,      # (1, EMBED_PAD)
                      x_scr):     # VMEM (CTX, D) residual-stream accumulator
    b = pl.program_id(0)
    l = pl.program_id(1)

    @pl.when(l == 0)
    def _():
        x_scr[...] = x0_ref[...]

    mb = misc_ref[...]
    ln1_w, ln1_b = mb[0:1, :D], mb[1:2, :D]
    ln2_w, ln2_b = mb[2:3, :D], mb[3:4, :D]
    out_b, fc2_b = mb[4:5, :D], mb[5:6, :D]
    fc1_b = mb[6:7, :]                                   # (1, 4D)
    qkv_b = mb[7:8, :3 * D]                              # (1, 3D)

    x = x_scr[...]
    scale = 1.0 / (DH ** 0.5)

    # ---- multi-head self-attention (pre-LN) ----
    h = _layernorm(x, ln1_w, ln1_b)
    # single full-width QKV matmul, lane width 3D
    qkv = jnp.dot(h, wqkv_ref[...], preferred_element_type=jnp.float32) + qkv_b
    q = qkv[:, :D] * scale                               # scale folded once
    k = qkv[:, D:2 * D]
    v = qkv[:, 2 * D:]

    # causal mask generated in-kernel (no HBM input, no block-diag (N,N))
    row = jax.lax.broadcasted_iota(jnp.int32, (CTX, CTX), 0)
    col = jax.lax.broadcasted_iota(jnp.int32, (CTX, CTX), 1)
    mask = jnp.where(col <= row, 0.0, -jnp.inf).astype(jnp.float32)

    heads = []
    for hh in range(H):                                  # head-dim contraction is inherently K=DH
        sl = slice(hh * DH, (hh + 1) * DH)
        s = jax.lax.dot_general(q[:, sl], k[:, sl], (((1,), (1,)), ((), ())),
                                preferred_element_type=jnp.float32) + mask
        s = s - jnp.max(s, axis=-1, keepdims=True)
        p = jnp.exp(s)
        p = p / jnp.sum(p, axis=-1, keepdims=True)       # exact normalization
        heads.append(jnp.dot(p, v[:, sl], preferred_element_type=jnp.float32))
    o = jnp.concatenate(heads, axis=-1)                  # (CTX, D), head-major
    # single full-width out-projection (K=D) instead of H K=DH matmuls + sum
    x = x + jnp.dot(o, wout_ref[...], preferred_element_type=jnp.float32) + out_b

    # ---- MLP with QuickGELU ----
    h = _layernorm(x, ln2_w, ln2_b)
    h = jnp.dot(h, wfc1_ref[...], preferred_element_type=jnp.float32) + fc1_b
    h = h * jax.nn.sigmoid(1.702 * h)
    x = x + jnp.dot(h, wfc2_ref[...], preferred_element_type=jnp.float32) + fc2_b

    x_scr[...] = x

    @pl.when(l == LAYERS - 1)
    def _():
        # EOT pooling as one-hot (1,CTX)@(CTX,D) matmul, then ln_final + proj
        pos = jax.lax.broadcasted_iota(jnp.int32, (1, CTX), 1)
        onehot = (pos == idx_ref[b]).astype(jnp.float32)
        pooled = jnp.dot(onehot, x, preferred_element_type=jnp.float32)   # (1, D)
        pooled = _layernorm(pooled, lnf_ref[0:1, :], lnf_ref[1:2, :])
        o_ref[...] = jnp.dot(pooled, proj_ref[...],
                             preferred_element_type=jnp.float32)          # lane-dense store


def _pack_params(p):
    """Wrapper-side repacking (free relative to the kernel)."""
    def row(v):   # (L,1,w) -> (L,1,4D), zero-padded along lanes
        return jnp.pad(v, ((0, 0), (0, 0), (0, 4 * D - v.shape[-1])))

    misc = jnp.concatenate(
        [row(p["ln1_w"]), row(p["ln1_b"]), row(p["ln2_w"]), row(p["ln2_b"]),
         row(p["out_b"]), row(p["fc2_b"]), p["fc1_b"], row(p["qkv_b"])],
        axis=1)                                               # (L, 8, 4D)
    lnf = jnp.concatenate([p["lnf_w"], p["lnf_b"]], axis=0)   # (2, D)
    proj = jnp.pad(p["proj"], ((0, 0), (0, EMBED_PAD - EMBED)))
    return misc, lnf, proj


def clip_encode_text(text, p):
    """Pallas implementation of CLIP encode_text. text: [B, CTX] int32."""
    # JAX glue: embedding gather + positional add + EOT index (argmax).
    x = (p["tok"][text] + p["pos"][None]).astype(jnp.float32)   # (B, CTX, D)
    eot = jnp.argmax(text, axis=-1).astype(jnp.int32)           # (B,)

    misc, lnf, proj = _pack_params(p)

    # TODO(synk): cast matmul operands to bf16 on v6e/v7x (keep f32 accum and
    #   f32 LN/softmax/GELU); kept f32 here for tight parity with the f32 ref.
    # TODO(synk): at production sizes add pipeline_mode=pl.Buffered(2) on the
    #   per-layer weight specs and tile CTX as an extra parallel axis.
    grid_spec = pltpu.PrefetchScalarGridSpec(
        num_scalar_prefetch=1,
        grid=(B, LAYERS),                     # batch parallel, layer streamed
        in_specs=[
            pl.BlockSpec((None, CTX, D), lambda b, l, idx: (b, 0, 0)),     # x
            pl.BlockSpec((None, D, 3 * D), lambda b, l, idx: (l, 0, 0)),   # wqkv
            pl.BlockSpec((None, D, D), lambda b, l, idx: (l, 0, 0)),       # wout
            pl.BlockSpec((None, D, 4 * D), lambda b, l, idx: (l, 0, 0)),   # fc1_w
            pl.BlockSpec((None, 4 * D, D), lambda b, l, idx: (l, 0, 0)),   # fc2_w
            pl.BlockSpec((None, 8, 4 * D), lambda b, l, idx: (l, 0, 0)),   # misc
            pl.BlockSpec((2, D), lambda b, l, idx: (0, 0)),                # lnf
            pl.BlockSpec((D, EMBED_PAD), lambda b, l, idx: (0, 0)),        # proj
        ],
        out_specs=pl.BlockSpec((None, 1, EMBED_PAD), lambda b, l, idx: (b, 0, 0)),
        scratch_shapes=[pltpu.VMEM((CTX, D), jnp.float32)],
    )
    out = pl.pallas_call(
        _clip_text_kernel,
        out_shape=jax.ShapeDtypeStruct((B, 1, EMBED_PAD), jnp.float32),
        grid_spec=grid_spec,
        compiler_params=pltpu.CompilerParams(
            dimension_semantics=("parallel", "arbitrary")),
    )(eot, x, p["qkv_w"], p["out_w"], p["fc1_w"], p["fc2_w"], misc, lnf, proj)
    return out[:, 0, :EMBED]


# ---------------- pure-JAX reference (mirrors CLIP.encode_text) --------------
def clip_encode_text_ref(text, p):
    x = p["tok"][text] + p["pos"][None]
    row = jnp.arange(CTX)[:, None]
    col = jnp.arange(CTX)[None, :]
    mask = jnp.where(col <= row, 0.0, -jnp.inf).astype(jnp.float32)
    scale = 1.0 / (DH ** 0.5)

    def ln(v, w, b):
        mu = jnp.mean(v, axis=-1, keepdims=True)
        var = jnp.mean((v - mu) ** 2, axis=-1, keepdims=True)
        return (v - mu) * jax.lax.rsqrt(var + EPS) * w + b

    for l in range(LAYERS):
        h = ln(x, p["ln1_w"][l], p["ln1_b"][l])
        qkv = h @ p["qkv_w"][l] + p["qkv_b"][l]
        q, k, v = qkv[..., :D], qkv[..., D:2 * D], qkv[..., 2 * D:]
        q = q.reshape(B, CTX, H, DH).transpose(0, 2, 1, 3)
        k = k.reshape(B, CTX, H, DH).transpose(0, 2, 1, 3)
        v = v.reshape(B, CTX, H, DH).transpose(0, 2, 1, 3)
        s = jnp.einsum("bhqd,bhkd->bhqk", q, k) * scale + mask
        pr = jax.nn.softmax(s, axis=-1)
        a = jnp.einsum("bhqk,bhkd->bhqd", pr, v)
        a = a.transpose(0, 2, 1, 3).reshape(B, CTX, D)
        x = x + (a @ p["out_w"][l] + p["out_b"][l])

        h = ln(x, p["ln2_w"][l], p["ln2_b"][l])
        h = h @ p["fc1_w"][l] + p["fc1_b"][l]
        h = h * jax.nn.sigmoid(1.702 * h)
        x = x + (h @ p["fc2_w"][l] + p["fc2_b"][l])

    x = ln(x, p["lnf_w"], p["lnf_b"])
    eot = jnp.argmax(text, axis=-1)
    return x[jnp.arange(B), eot] @ p["proj"]


def init_params(key):
    ks = jax.random.split(key, 20)
    n = lambda i, shape, s: (s * jax.random.normal(ks[i], shape)).astype(jnp.float32)
    return {
        "tok":   n(0, (VOCAB, D), 0.02),
        "pos":   n(1, (CTX, D), 0.01),
        "ln1_w": 1.0 + n(2, (LAYERS, 1, D), 0.1),
        "ln1_b": n(3, (LAYERS, 1, D), 0.01),
        "qkv_w": n(4, (LAYERS, D, 3 * D), D ** -0.5),
        "qkv_b": n(5, (LAYERS, 1, 3 * D), 0.01),
        "out_w": n(6, (LAYERS, D, D), D ** -0.5),
        "out_b": n(7, (LAYERS, 1, D), 0.01),
        "ln2_w": 1.0 + n(8, (LAYERS, 1, D), 0.1),
        "ln2_b": n(9, (LAYERS, 1, D), 0.01),
        "fc1_w": n(10, (LAYERS, D, 4 * D), D ** -0.5),
        "fc1_b": n(11, (LAYERS, 1, 4 * D), 0.01),
        "fc2_w": n(12, (LAYERS, 4 * D, D), (4 * D) ** -0.5),
        "fc2_b": n(13, (LAYERS, 1, D), 0.01),
        "lnf_w": 1.0 + n(14, (1, D), 0.1),
        "lnf_b": n(15, (1, D), 0.01),
        "proj":  n(16, (D, EMBED), D ** -0.5),
    }


if __name__ == "__main__":
    # keep the XLA-side reference matmuls at full f32 precision so the
    # comparison isolates kernel correctness, not MXU default-precision noise
    jax.config.update("jax_default_matmul_precision", "highest")

    key = jax.random.PRNGKey(0)
    pkey, tkey = jax.random.split(key)
    params = init_params(pkey)

    # deterministic token ids in [1, VOCAB-2], EOT (= VOCAB-1) placed per-row
    text = jax.random.randint(tkey, (B, CTX), 1, VOCAB - 1, dtype=jnp.int32)
    text = text.at[0, 5].set(VOCAB - 1)   # EOT for row 0 at pos 5
    text = text.at[1, 7].set(VOCAB - 1)   # EOT for row 1 at pos 7

    out = jax.block_until_ready(clip_encode_text(text, params))
    ref = jax.block_until_ready(clip_encode_text_ref(text, params))

    assert out.shape == (B, EMBED), out.shape
    assert jnp.all(jnp.isfinite(out))
    # exact softmax normalization (no approx reciprocal) restores parity
    assert jnp.allclose(out, ref, rtol=1e-3, atol=1e-3), (out, ref)
    print("KERNEL_OK")
</pallas_src>

<mosaic_0001>
module attributes {stable_mosaic.version = 11 : i64} {
  func.func @_clip_text_kernel(%arg0: i32, %arg1: i32, %arg2: memref<2xi32, #tpu.memory_space<smem>>, %arg3: memref<1x8x32xf32, #tpu.memory_space<vmem>>, %arg4: memref<1x32x96xf32, #tpu.memory_space<vmem>>, %arg5: memref<1x32x32xf32, #tpu.memory_space<vmem>>, %arg6: memref<1x32x128xf32, #tpu.memory_space<vmem>>, %arg7: memref<1x128x32xf32, #tpu.memory_space<vmem>>, %arg8: memref<1x8x128xf32, #tpu.memory_space<vmem>>, %arg9: memref<2x32xf32, #tpu.memory_space<vmem>>, %arg10: memref<32x128xf32, #tpu.memory_space<vmem>>, %arg11: memref<1x1x128xf32, #tpu.memory_space<vmem>>, %arg12: memref<8x32xf32, #tpu.memory_space<vmem>>) attributes {dimension_semantics = [#tpu.dimension_semantics<parallel>, #tpu.dimension_semantics<arbitrary>], iteration_bounds = array<i64: 2, 2>, scalar_prefetch = 1 : i64, scratch_operands = 1 : i64, tpu.core_type = #tpu.core_type<tc>, window_params = [{transform_indices = @transform_0, window_bounds = array<i64: 1, 8, 32>}, {transform_indices = @transform_1, window_bounds = array<i64: 1, 32, 96>}, {transform_indices = @transform_2, window_bounds = array<i64: 1, 32, 32>}, {transform_indices = @transform_3, window_bounds = array<i64: 1, 32, 128>}, {transform_indices = @transform_4, window_bounds = array<i64: 1, 128, 32>}, {transform_indices = @transform_5, window_bounds = array<i64: 1, 8, 128>}, {pipeline_mode = #tpu.pipeline_mode<synchronous>, transform_indices = @transform_6, window_bounds = array<i64: 2, 32>}, {pipeline_mode = #tpu.pipeline_mode<synchronous>, transform_indices = @transform_7, window_bounds = array<i64: 32, 128>}, {transform_indices = @transform_8, window_bounds = array<i64: 1, 1, 128>}]} {
    %c0_i32 = arith.constant 0 : i32
    %0 = arith.cmpi eq, %arg1, %c0_i32 : i32
    %1 = arith.extui %0 : i1 to i32
    %c0_i32_0 = arith.constant 0 : i32
    %2 = arith.cmpi ne, %1, %c0_i32_0 : i32
    scf.if %2 {
      %c0_54 = arith.constant 0 : index
      %c0_55 = arith.constant 0 : index
      %c0_56 = arith.constant 0 : index
      %164 = vector.load %arg3[%c0_54, %c0_55, %c0_56] : memref<1x8x32xf32, #tpu.memory_space<vmem>>, vector<1x8x32xf32>
      %165 = vector.shape_cast %164 : vector<1x8x32xf32> to vector<8x32xf32>
      %c0_57 = arith.constant 0 : index
      %c0_58 = arith.constant 0 : index
      %166 = vector.load %arg12[%c0_57, %c0_58] : memref<8x32xf32, #tpu.memory_space<vmem>>, vector<8x32xf32>
      tpu.vector_store %arg12[%c0_57, %c0_58], %165 {strides = array<i32>} : memref<8x32xf32, #tpu.memory_space<vmem>>, vector<8x32xf32>,
    } else {
    }
    %c0 = arith.constant 0 : index
    %c0_1 = arith.constant 0 : index
    %c0_2 = arith.constant 0 : index
    %3 = vector.load %arg8[%c0, %c0_1, %c0_2] : memref<1x8x128xf32, #tpu.memory_space<vmem>>, vector<1x8x128xf32>
    %4 = vector.shape_cast %3 : vector<1x8x128xf32> to vector<8x128xf32>
    %5 = vector.extract_strided_slice %4 {offsets = [0, 0], sizes = [1, 32], strides = [1, 1]} : vector<8x128xf32> to vector<1x32xf32>
    %6 = vector.extract_strided_slice %4 {offsets = [1, 0], sizes = [1, 32], strides = [1, 1]} : vector<8x128xf32> to vector<1x32xf32>
    %7 = vector.extract_strided_slice %4 {offsets = [2, 0], sizes = [1, 32], strides = [1, 1]} : vector<8x128xf32> to vector<1x32xf32>
    %8 = vector.extract_strided_slice %4 {offsets = [3, 0], sizes = [1, 32], strides = [1, 1]} : vector<8x128xf32> to vector<1x32xf32>
    %9 = vector.extract_strided_slice %4 {offsets = [4, 0], sizes = [1, 32], strides = [1, 1]} : vector<8x128xf32> to vector<1x32xf32>
    %10 = vector.extract_strided_slice %4 {offsets = [5, 0], sizes = [1, 32], strides = [1, 1]} : vector<8x128xf32> to vector<1x32xf32>
    %11 = vector.extract_strided_slice %4 {offsets = [6, 0], sizes = [1, 128], strides = [1, 1]} : vector<8x128xf32> to vector<1x128xf32>
    %12 = vector.extract_strided_slice %4 {offsets = [7, 0], sizes = [1, 96], strides = [1, 1]} : vector<8x128xf32> to vector<1x96xf32>
    %c0_3 = arith.constant 0 : index
    %c0_4 = arith.constant 0 : index
    %13 = vector.load %arg12[%c0_3, %c0_4] : memref<8x32xf32, #tpu.memory_space<vmem>>, vector<8x32xf32>
    %cst = arith.constant dense<0.000000e+00> : vector<8xf32>
    %14 = vector.multi_reduction <add>, %13, %cst [1] : vector<8x32xf32> to vector<8xf32>
    %15 = vector.shape_cast %14 : vector<8xf32> to vector<8x1xf32>
    %cst_5 = arith.constant 3.200000e+01 : f32
    %16 = vector.broadcast %cst_5 : f32 to vector<8x1xf32>
    %17 = arith.divf %15, %16 : vector<8x1xf32>
    %18 = vector.broadcast %17 : vector<8x1xf32> to vector<8x32xf32>
    %19 = arith.subf %13, %18 : vector<8x32xf32>
    %20 = arith.mulf %19, %19 : vector<8x32xf32>
    %cst_6 = arith.constant dense<0.000000e+00> : vector<8xf32>
    %21 = vector.multi_reduction <add>, %20, %cst_6 [1] : vector<8x32xf32> to vector<8xf32>
    %22 = vector.shape_cast %21 : vector<8xf32> to vector<8x1xf32>
    %cst_7 = arith.constant 3.200000e+01 : f32
    %23 = vector.broadcast %cst_7 : f32 to vector<8x1xf32>
    %24 = arith.divf %22, %23 : vector<8x1xf32>
    %25 = vector.broadcast %17 : vector<8x1xf32> to vector<8x32xf32>
    %26 = arith.subf %13, %25 : vector<8x32xf32>
    %cst_8 = arith.constant 9.99999974E-6 : f32
    %27 = vector.broadcast %cst_8 : f32 to vector<8x1xf32>
    %28 = arith.addf %24, %27 : vector<8x1xf32>
    %29 = math.rsqrt %28 : vector<8x1xf32>
    %30 = vector.broadcast %29 : vector<8x1xf32> to vector<8x32xf32>
    %31 = arith.mulf %26, %30 : vector<8x32xf32>
    %32 = vector.broadcast %5 : vector<1x32xf32> to vector<8x32xf32>
    %33 = arith.mulf %31, %32 : vector<8x32xf32>
    %34 = vector.broadcast %6 : vector<1x32xf32> to vector<8x32xf32>
    %35 = arith.addf %33, %34 : vector<8x32xf32>
    %c0_9 = arith.constant 0 : index
    %c0_10 = arith.constant 0 : index
    %c0_11 = arith.constant 0 : index
    %36 = vector.load %arg4[%c0_9, %c0_10, %c0_11] : memref<1x32x96xf32, #tpu.memory_space<vmem>>, vector<1x32x96xf32>
    %37 = vector.shape_cast %36 : vector<1x32x96xf32> to vector<32x96xf32>
    %cst_12 = arith.constant dense<0.000000e+00> : vector<8x96xf32>
    %38 = tpu.matmul %35, %37, %cst_12 {dimension_numbers = #tpu.dot_dimension_numbers<[1], [0], [0], [1], [0, 0, 1, 1], [], []>, precision = #tpu.contract_precision<fp32>} : vector<8x32xf32>, vector<32x96xf32>, vector<8x96xf32> -> vector<8x96xf32>
    %39 = vector.broadcast %12 : vector<1x96xf32> to vector<8x96xf32>
    %40 = arith.addf %38, %39 : vector<8x96xf32>
    %41 = vector.extract_strided_slice %40 {offsets = [0, 0], sizes = [8, 32], strides = [1, 1]} : vector<8x96xf32> to vector<8x32xf32>
    %cst_13 = arith.constant 0.353553385 : f32
    %42 = vector.broadcast %cst_13 : f32 to vector<8x32xf32>
    %43 = arith.mulf %41, %42 : vector<8x32xf32>
    %44 = vector.extract_strided_slice %40 {offsets = [0, 32], sizes = [8, 32], strides = [1, 1]} : vector<8x96xf32> to vector<8x32xf32>
    %45 = vector.extract_strided_slice %40 {offsets = [0, 64], sizes = [8, 32], strides = [1, 1]} : vector<8x96xf32> to vector<8x32xf32>
    %46 = tpu.iota {dimensions = array<i32: 0>} : vector<8x8xi32>
    %47 = tpu.iota {dimensions = array<i32: 1>} : vector<8x8xi32>
    %48 = arith.cmpi sle, %47, %46 : vector<8x8xi32>
    %cst_14 = arith.constant 0.000000e+00 : f32
    %cst_15 = arith.constant 0xFF800000 : f32
    %49 = vector.broadcast %cst_14 : f32 to vector<8x8xf32>
    %50 = vector.broadcast %cst_15 : f32 to vector<8x8xf32>
    %51 = arith.select %48, %49, %50 : vector<8x8xi1>, vector<8x8xf32>
    %52 = vector.extract_strided_slice %43 {offsets = [0, 0], sizes = [8, 8], strides = [1, 1]} : vector<8x32xf32> to vector<8x8xf32>
    %53 = vector.extract_strided_slice %44 {offsets = [0, 0], sizes = [8, 8], strides = [1, 1]} : vector<8x32xf32> to vector<8x8xf32>
    %cst_16 = arith.constant dense<0.000000e+00> : vector<8x8xf32>
    %54 = tpu.matmul %52, %53, %cst_16 {dimension_numbers = #tpu.dot_dimension_numbers<[1], [1], [0], [0], [0, 0, 1, 0], [], []>, precision = #tpu.contract_precision<fp32>} : vector<8x8xf32>, vector<8x8xf32>, vector<8x8xf32> -> vector<8x8xf32>
    %55 = arith.addf %54, %51 : vector<8x8xf32>
    %cst_17 = arith.constant dense<0xFF800000> : vector<8xf32>
    %56 = vector.multi_reduction <maximumf>, %55, %cst_17 [1] : vector<8x8xf32> to vector<8xf32>
    %57 = vector.shape_cast %56 : vector<8xf32> to vector<8x1xf32>
    %58 = vector.broadcast %57 : vector<8x1xf32> to vector<8x8xf32>
    %59 = arith.subf %55, %58 : vector<8x8xf32>
    %60 = math.exp %59 : vector<8x8xf32>
    %cst_18 = arith.constant dense<0.000000e+00> : vector<8xf32>
    %61 = vector.multi_reduction <add>, %60, %cst_18 [1] : vector<8x8xf32> to vector<8xf32>
    %62 = vector.shape_cast %61 : vector<8xf32> to vector<8x1xf32>
    %63 = vector.broadcast %62 : vector<8x1xf32> to vector<8x8xf32>
    %64 = arith.divf %60, %63 : vector<8x8xf32>
    %65 = vector.extract_strided_slice %45 {offsets = [0, 0], sizes = [8, 8], strides = [1, 1]} : vector<8x32xf32> to vector<8x8xf32>
    %cst_19 = arith.constant dense<0.000000e+00> : vector<8x8xf32>
    %66 = tpu.matmul %64, %65, %cst_19 {dimension_numbers = #tpu.dot_dimension_numbers<[1], [0], [0], [1], [0, 0, 1, 1], [], []>, precision = #tpu.contract_precision<fp32>} : vector<8x8xf32>, vector<8x8xf32>, vector<8x8xf32> -> vector<8x8xf32>
    %67 = vector.extract_strided_slice %43 {offsets = [0, 8], sizes = [8, 8], strides = [1, 1]} : vector<8x32xf32> to vector<8x8xf32>
    %68 = vector.extract_strided_slice %44 {offsets = [0, 8], sizes = [8, 8], strides = [1, 1]} : vector<8x32xf32> to vector<8x8xf32>
    %cst_20 = arith.constant dense<0.000000e+00> : vector<8x8xf32>
    %69 = tpu.matmul %67, %68, %cst_20 {dimension_numbers = #tpu.dot_dimension_numbers<[1], [1], [0], [0], [0, 0, 1, 0], [], []>, precision = #tpu.contract_precision<fp32>} : vector<8x8xf32>, vector<8x8xf32>, vector<8x8xf32> -> vector<8x8xf32>
    %70 = arith.addf %69, %51 : vector<8x8xf32>
    %cst_21 = arith.constant dense<0xFF800000> : vector<8xf32>
    %71 = vector.multi_reduction <maximumf>, %70, %cst_21 [1] : vector<8x8xf32> to vector<8xf32>
    %72 = vector.shape_cast %71 : vector<8xf32> to vector<8x1xf32>
    %73 = vector.broadcast %72 : vector<8x1xf32> to vector<8x8xf32>
    %74 = arith.subf %70, %73 : vector<8x8xf32>
    %75 = math.exp %74 : vector<8x8xf32>
    %cst_22 = arith.constant dense<0.000000e+00> : vector<8xf32>
    %76 = vector.multi_reduction <add>, %75, %cst_22 [1] : vector<8x8xf32> to vector<8xf32>
    %77 = vector.shape_cast %76 : vector<8xf32> to vector<8x1xf32>
    %78 = vector.broadcast %77 : vector<8x1xf32> to vector<8x8xf32>
    %79 = arith.divf %75, %78 : vector<8x8xf32>
    %80 = vector.extract_strided_slice %45 {offsets = [0, 8], sizes = [8, 8], strides = [1, 1]} : vector<8x32xf32> to vector<8x8xf32>
    %cst_23 = arith.constant dense<0.000000e+00> : vector<8x8xf32>
    %81 = tpu.matmul %79, %80, %cst_23 {dimension_numbers = #tpu.dot_dimension_numbers<[1], [0], [0], [1], [0, 0, 1, 1], [], []>, precision = #tpu.contract_precision<fp32>} : vector<8x8xf32>, vector<8x8xf32>, vector<8x8xf32> -> vector<8x8xf32>
    %82 = vector.extract_strided_slice %43 {offsets = [0, 16], sizes = [8, 8], strides = [1, 1]} : vector<8x32xf32> to vector<8x8xf32>
    %83 = vector.extract_strided_slice %44 {offsets = [0, 16], sizes = [8, 8], strides = [1, 1]} : vector<8x32xf32> to vector<8x8xf32>
    %cst_24 = arith.constant dense<0.000000e+00> : vector<8x8xf32>
    %84 = tpu.matmul %82, %83, %cst_24 {dimension_numbers = #tpu.dot_dimension_numbers<[1], [1], [0], [0], [0, 0, 1, 0], [], []>, precision = #tpu.contract_precision<fp32>} : vector<8x8xf32>, vector<8x8xf32>, vector<8x8xf32> -> vector<8x8xf32>
    %85 = arith.addf %84, %51 : vector<8x8xf32>
    %cst_25 = arith.constant dense<0xFF800000> : vector<8xf32>
    %86 = vector.multi_reduction <maximumf>, %85, %cst_25 [1] : vector<8x8xf32> to vector<8xf32>
    %87 = vector.shape_cast %86 : vector<8xf32> to vector<8x1xf32>
    %88 = vector.broadcast %87 : vector<8x1xf32> to vector<8x8xf32>
    %89 = arith.subf %85, %88 : vector<8x8xf32>
    %90 = math.exp %89 : vector<8x8xf32>
    %cst_26 = arith.constant dense<0.000000e+00> : vector<8xf32>
    %91 = vector.multi_reduction <add>, %90, %cst_26 [1] : vector<8x8xf32> to vector<8xf32>
    %92 = vector.shape_cast %91 : vector<8xf32> to vector<8x1xf32>
    %93 = vector.broadcast %92 : vector<8x1xf32> to vector<8x8xf32>
    %94 = arith.divf %90, %93 : vector<8x8xf32>
    %95 = vector.extract_strided_slice %45 {offsets = [0, 16], sizes = [8, 8], strides = [1, 1]} : vector<8x32xf32> to vector<8x8xf32>
    %cst_27 = arith.constant dense<0.000000e+00> : vector<8x8xf32>
    %96 = tpu.matmul %94, %95, %cst_27 {dimension_numbers = #tpu.dot_dimension_numbers<[1], [0], [0], [1], [0, 0, 1, 1], [], []>, precision = #tpu.contract_precision<fp32>} : vector<8x8xf32>, vector<8x8xf32>, vector<8x8xf32> -> vector<8x8xf32>
    %97 = vector.extract_strided_slice %43 {offsets = [0, 24], sizes = [8, 8], strides = [1, 1]} : vector<8x32xf32> to vector<8x8xf32>
    %98 = vector.extract_strided_slice %44 {offsets = [0, 24], sizes = [8, 8], strides = [1, 1]} : vector<8x32xf32> to vector<8x8xf32>
    %cst_28 = arith.constant dense<0.000000e+00> : vector<8x8xf32>
    %99 = tpu.matmul %97, %98, %cst_28 {dimension_numbers = #tpu.dot_dimension_numbers<[1], [1], [0], [0], [0, 0, 1, 0], [], []>, precision = #tpu.contract_precision<fp32>} : vector<8x8xf32>, vector<8x8xf32>, vector<8x8xf32> -> vector<8x8xf32>
    %100 = arith.addf %99, %51 : vector<8x8xf32>
    %cst_29 = arith.constant dense<0xFF800000> : vector<8xf32>
    %101 = vector.multi_reduction <maximumf>, %100, %cst_29 [1] : vector<8x8xf32> to vector<8xf32>
    %102 = vector.shape_cast %101 : vector<8xf32> to vector<8x1xf32>
    %103 = vector.broadcast %102 : vector<8x1xf32> to vector<8x8xf32>
    %104 = arith.subf %100, %103 : vector<8x8xf32>
    %105 = math.exp %104 : vector<8x8xf32>
    %cst_30 = arith.constant dense<0.000000e+00> : vector<8xf32>
    %106 = vector.multi_reduction <add>, %105, %cst_30 [1] : vector<8x8xf32> to vector<8xf32>
    %107 = vector.shape_cast %106 : vector<8xf32> to vector<8x1xf32>
    %108 = vector.broadcast %107 : vector<8x1xf32> to vector<8x8xf32>
    %109 = arith.divf %105, %108 : vector<8x8xf32>
    %110 = vector.extract_strided_slice %45 {offsets = [0, 24], sizes = [8, 8], strides = [1, 1]} : vector<8x32xf32> to vector<8x8xf32>
    %cst_31 = arith.constant dense<0.000000e+00> : vector<8x8xf32>
    %111 = tpu.matmul %109, %110, %cst_31 {dimension_numbers = #tpu.dot_dimension_numbers<[1], [0], [0], [1], [0, 0, 1, 1], [], []>, precision = #tpu.contract_precision<fp32>} : vector<8x8xf32>, vector<8x8xf32>, vector<8x8xf32> -> vector<8x8xf32>
    %112 = tpu.concatenate %66, %81, %96, %111 in 1 : vector<8x8xf32>, vector<8x8xf32>, vector<8x8xf32>, vector<8x8xf32> -> vector<8x32xf32>
    %c0_32 = arith.constant 0 : index
    %c0_33 = arith.constant 0 : index
    %c0_34 = arith.constant 0 : index
    %113 = vector.load %arg5[%c0_32, %c0_33, %c0_34] : memref<1x32x32xf32, #tpu.memory_space<vmem>>, vector<1x32x32xf32>
    %114 = vector.shape_cast %113 : vector<1x32x32xf32> to vector<32x32xf32>
    %cst_35 = arith.constant dense<0.000000e+00> : vector<8x32xf32>
    %115 = tpu.matmul %112, %114, %cst_35 {dimension_numbers = #tpu.dot_dimension_numbers<[1], [0], [0], [1], [0, 0, 1, 1], [], []>, precision = #tpu.contract_precision<fp32>} : vector<8x32xf32>, vector<32x32xf32>, vector<8x32xf32> -> vector<8x32xf32>
    %116 = arith.addf %13, %115 : vector<8x32xf32>
    %117 = vector.broadcast %9 : vector<1x32xf32> to vector<8x32xf32>
    %118 = arith.addf %116, %117 : vector<8x32xf32>
    %cst_36 = arith.constant dense<0.000000e+00> : vector<8xf32>
    %119 = vector.multi_reduction <add>, %118, %cst_36 [1] : vector<8x32xf32> to vector<8xf32>
    %120 = vector.shape_cast %119 : vector<8xf32> to vector<8x1xf32>
    %cst_37 = arith.constant 3.200000e+01 : f32
    %121 = vector.broadcast %cst_37 : f32 to vector<8x1xf32>
    %122 = arith.divf %120, %121 : vector<8x1xf32>
    %123 = vector.broadcast %122 : vector<8x1xf32> to vector<8x32xf32>
    %124 = arith.subf %118, %123 : vector<8x32xf32>
    %125 = arith.mulf %124, %124 : vector<8x32xf32>
    %cst_38 = arith.constant dense<0.000000e+00> : vector<8xf32>
    %126 = vector.multi_reduction <add>, %125, %cst_38 [1] : vector<8x32xf32> to vector<8xf32>
    %127 = vector.shape_cast %126 : vector<8xf32> to vector<8x1xf32>
    %cst_39 = arith.constant 3.200000e+01 : f32
    %128 = vector.broadcast %cst_39 : f32 to vector<8x1xf32>
    %129 = arith.divf %127, %128 : vector<8x1xf32>
    %130 = vector.broadcast %122 : vector<8x1xf32> to vector<8x32xf32>
    %131 = arith.subf %118, %130 : vector<8x32xf32>
    %cst_40 = arith.constant 9.99999974E-6 : f32
    %132 = vector.broadcast %cst_40 : f32 to vector<8x1xf32>
    %133 = arith.addf %129, %132 : vector<8x1xf32>
    %134 = math.rsqrt %133 : vector<8x1xf32>
    %135 = vector.broadcast %134 : vector<8x1xf32> to vector<8x32xf32>
    %136 = arith.mulf %131, %135 : vector<8x32xf32>
    %137 = vector.broadcast %7 : vector<1x32xf32> to vector<8x32xf32>
    %138 = arith.mulf %136, %137 : vector<8x32xf32>
    %139 = vector.broadcast %8 : vector<1x32xf32> to vector<8x32xf32>
    %140 = arith.addf %138, %139 : vector<8x32xf32>
    %c0_41 = arith.constant 0 : index
    %c0_42 = arith.constant 0 : index
    %c0_43 = arith.constant 0 : index
    %141 = vector.load %arg6[%c0_41, %c0_42, %c0_43] : memref<1x32x128xf32, #tpu.memory_space<vmem>>, vector<1x32x128xf32>
    %142 = vector.shape_cast %141 : vector<1x32x128xf32> to vector<32x128xf32>
    %cst_44 = arith.constant dense<0.000000e+00> : vector<8x128xf32>
    %143 = tpu.matmul %140, %142, %cst_44 {dimension_numbers = #tpu.dot_dimension_numbers<[1], [0], [0], [1], [0, 0, 1, 1], [], []>, precision = #tpu.contract_precision<fp32>} : vector<8x32xf32>, vector<32x128xf32>, vector<8x128xf32> -> vector<8x128xf32>
    %144 = vector.broadcast %11 : vector<1x128xf32> to vector<8x128xf32>
    %145 = arith.addf %143, %144 : vector<8x128xf32>
    %cst_45 = arith.constant 1.702000e+00 : f32
    %146 = vector.broadcast %cst_45 : f32 to vector<8x128xf32>
    %147 = arith.mulf %146, %145 : vector<8x128xf32>
    %148 = arith.negf %147 : vector<8x128xf32>
    %149 = math.exp %148 : vector<8x128xf32>
    %cst_46 = arith.constant 1.000000e+00 : f32
    %150 = vector.broadcast %cst_46 : f32 to vector<8x128xf32>
    %151 = arith.addf %150, %149 : vector<8x128xf32>
    %152 = arith.divf %150, %151 : vector<8x128xf32>
    %153 = arith.mulf %145, %152 : vector<8x128xf32>
    %c0_47 = arith.constant 0 : index
    %c0_48 = arith.constant 0 : index
    %c0_49 = arith.constant 0 : index
    %154 = vector.load %arg7[%c0_47, %c0_48, %c0_49] : memref<1x128x32xf32, #tpu.memory_space<vmem>>, vector<1x128x32xf32>
    %155 = vector.shape_cast %154 : vector<1x128x32xf32> to vector<128x32xf32>
    %cst_50 = arith.constant dense<0.000000e+00> : vector<8x32xf32>
    %156 = tpu.matmul %153, %155, %cst_50 {dimension_numbers = #tpu.dot_dimension_numbers<[1], [0], [0], [1], [0, 0, 1, 1], [], []>, precision = #tpu.contract_precision<fp32>} : vector<8x128xf32>, vector<128x32xf32>, vector<8x32xf32> -> vector<8x32xf32>
    %157 = arith.addf %118, %156 : vector<8x32xf32>
    %158 = vector.broadcast %10 : vector<1x32xf32> to vector<8x32xf32>
    %159 = arith.addf %157, %158 : vector<8x32xf32>
    %c0_51 = arith.constant 0 : index
    %c0_52 = arith.constant 0 : index
    %160 = vector.load %arg12[%c0_51, %c0_52] : memref<8x32xf32, #tpu.memory_space<vmem>>, vector<8x32xf32>
    tpu.vector_store %arg12[%c0_51, %c0_52], %159 {strides = array<i32>} : memref<8x32xf32, #tpu.memory_space<vmem>>, vector<8x32xf32>,
    %c1_i32 = arith.constant 1 : i32
    %161 = arith.cmpi eq, %arg1, %c1_i32 : i32
    %162 = arith.extui %161 : i1 to i32
    %c0_i32_53 = arith.constant 0 : i32
    %163 = arith.cmpi ne, %162, %c0_i32_53 : i32
    scf.if %163 {
      %164 = tpu.iota {dimensions = array<i32: 1>} : vector<1x8xi32>
      %165 = arith.index_cast %arg0 : i32 to index
      %166 = memref.load %arg2[%165] : memref<2xi32, #tpu.memory_space<smem>>
      %167 = vector.broadcast %166 : i32 to vector<1x8xi32>
      %168 = arith.cmpi eq, %164, %167 : vector<1x8xi32>
      %169 = arith.extui %168 : vector<1x8xi1> to vector<1x8xi32>
      %170 = arith.sitofp %169 : vector<1x8xi32> to vector<1x8xf32>
      %cst_54 = arith.constant dense<0.000000e+00> : vector<1x32xf32>
      %171 = tpu.matmul %170, %159, %cst_54 {dimension_numbers = #tpu.dot_dimension_numbers<[1], [0], [0], [1], [0, 0, 1, 1], [], []>, precision = #tpu.contract_precision<fp32>} : vector<1x8xf32>, vector<8x32xf32>, vector<1x32xf32> -> vector<1x32xf32>
      %c0_55 = arith.constant 0 : index
      %c0_56 = arith.constant 0 : index
      %172 = vector.load %arg9[%c0_55, %c0_56] : memref<2x32xf32, #tpu.memory_space<vmem>>, vector<1x32xf32>
      %c1 = arith.constant 1 : index
      %c0_57 = arith.constant 0 : index
      %173 = vector.load %arg9[%c1, %c0_57] : memref<2x32xf32, #tpu.memory_space<vmem>>, vector<1x32xf32>
      %cst_58 = arith.constant dense<0.000000e+00> : vector<1xf32>
      %174 = vector.multi_reduction <add>, %171, %cst_58 [1] : vector<1x32xf32> to vector<1xf32>
      %175 = vector.shape_cast %174 : vector<1xf32> to vector<1x1xf32>
      %cst_59 = arith.constant 3.200000e+01 : f32
      %176 = vector.broadcast %cst_59 : f32 to vector<1x1xf32>
      %177 = arith.divf %175, %176 : vector<1x1xf32>
      %178 = vector.broadcast %177 : vector<1x1xf32> to vector<1x32xf32>
      %179 = arith.subf %171, %178 : vector<1x32xf32>
      %180 = arith.mulf %179, %179 : vector<1x32xf32>
      %cst_60 = arith.constant dense<0.000000e+00> : vector<1xf32>
      %181 = vector.multi_reduction <add>, %180, %cst_60 [1] : vector<1x32xf32> to vector<1xf32>
      %182 = vector.shape_cast %181 : vector<1xf32> to vector<1x1xf32>
      %cst_61 = arith.constant 3.200000e+01 : f32
      %183 = vector.broadcast %cst_61 : f32 to vector<1x1xf32>
      %184 = arith.divf %182, %183 : vector<1x1xf32>
      %185 = vector.broadcast %177 : vector<1x1xf32> to vector<1x32xf32>
      %186 = arith.subf %171, %185 : vector<1x32xf32>
      %cst_62 = arith.constant 9.99999974E-6 : f32
      %187 = vector.broadcast %cst_62 : f32 to vector<1x1xf32>
      %188 = arith.addf %184, %187 : vector<1x1xf32>
      %189 = math.rsqrt %188 : vector<1x1xf32>
      %190 = vector.broadcast %189 : vector<1x1xf32> to vector<1x32xf32>
      %191 = arith.mulf %186, %190 : vector<1x32xf32>
      %192 = arith.mulf %191, %172 : vector<1x32xf32>
      %193 = arith.addf %192, %173 : vector<1x32xf32>
      %c0_63 = arith.constant 0 : index
      %c0_64 = arith.constant 0 : index
      %194 = vector.load %arg10[%c0_63, %c0_64] : memref<32x128xf32, #tpu.memory_space<vmem>>, vector<32x128xf32>
      %cst_65 = arith.constant dense<0.000000e+00> : vector<1x128xf32>
      %195 = tpu.matmul %193, %194, %cst_65 {dimension_numbers = #tpu.dot_dimension_numbers<[1], [0], [0], [1], [0, 0, 1, 1], [], []>, precision = #tpu.contract_precision<fp32>} : vector<1x32xf32>, vector<32x128xf32>, vector<1x128xf32> -> vector<1x128xf32>
      %c0_66 = arith.constant 0 : index
      %c0_67 = arith.constant 0 : index
      %c0_68 = arith.constant 0 : index
      %196 = vector.load %arg11[%c0_66, %c0_67, %c0_68] : memref<1x1x128xf32, #tpu.memory_space<vmem>>, vector<1x1x128xf32>
      %197 = vector.shape_cast %196 : vector<1x1x128xf32> to vector<1x128xf32>
      %198 = vector.shape_cast %195 : vector<1x128xf32> to vector<1x1x128xf32>
      tpu.vector_store %arg11[%c0_66, %c0_67, %c0_68], %198 {strides = array<i32>} : memref<1x1x128xf32, #tpu.memory_space<vmem>>, vector<1x1x128xf32>,
    } else {
    }
    return
  }
  func.func @transform_0(%arg0: i32, %arg1: i32, %arg2: memref<2xi32, #tpu.memory_space<smem>>) -> (i32, i32, i32) {
    %c0_i32 = arith.constant 0 : i32
    %c0_i32_0 = arith.constant 0 : i32
    %c0_i32_1 = arith.constant 0 : i32
    return %arg0, %c0_i32, %c0_i32_0 : i32, i32, i32
  }
  func.func @transform_1(%arg0: i32, %arg1: i32, %arg2: memref<2xi32, #tpu.memory_space<smem>>) -> (i32, i32, i32) {
    %c0_i32 = arith.constant 0 : i32
    %c0_i32_0 = arith.constant 0 : i32
    %c0_i32_1 = arith.constant 0 : i32
    return %arg1, %c0_i32, %c0_i32_0 : i32, i32, i32
  }
  func.func @transform_2(%arg0: i32, %arg1: i32, %arg2: memref<2xi32, #tpu.memory_space<smem>>) -> (i32, i32, i32) {
    %c0_i32 = arith.constant 0 : i32
    %c0_i32_0 = arith.constant 0 : i32
    %c0_i32_1 = arith.constant 0 : i32
    return %arg1, %c0_i32, %c0_i32_0 : i32, i32, i32
  }
  func.func @transform_3(%arg0: i32, %arg1: i32, %arg2: memref<2xi32, #tpu.memory_space<smem>>) -> (i32, i32, i32) {
    %c0_i32 = arith.constant 0 : i32
    %c0_i32_0 = arith.constant 0 : i32
    %c0_i32_1 = arith.constant 0 : i32
    return %arg1, %c0_i32, %c0_i32_0 : i32, i32, i32
  }
  func.func @transform_4(%arg0: i32, %arg1: i32, %arg2: memref<2xi32, #tpu.memory_space<smem>>) -> (i32, i32, i32) {
    %c0_i32 = arith.constant 0 : i32
    %c0_i32_0 = arith.constant 0 : i32
    %c0_i32_1 = arith.constant 0 : i32
    return %arg1, %c0_i32, %c0_i32_0 : i32, i32, i32
  }
  func.func @transform_5(%arg0: i32, %arg1: i32, %arg2: memref<2xi32, #tpu.memory_space<smem>>) -> (i32, i32, i32) {
    %c0_i32 = arith.constant 0 : i32
    %c0_i32_0 = arith.constant 0 : i32
    %c0_i32_1 = arith.constant 0 : i32
    return %arg1, %c0_i32, %c0_i32_0 : i32, i32, i32
  }
  func.func @transform_6(%arg0: i32, %arg1: i32, %arg2: memref<2xi32, #tpu.memory_space<smem>>) -> (i32, i32) {
    %c0_i32 = arith.constant 0 : i32
    %c0_i32_0 = arith.constant 0 : i32
    %c0_i32_1 = arith.constant 0 : i32
    return %c0_i32, %c0_i32_0 : i32, i32
  }
  func.func @transform_7(%arg0: i32, %arg1: i32, %arg2: memref<2xi32, #tpu.memory_space<smem>>) -> (i32, i32) {
    %c0_i32 = arith.constant 0 : i32
    %c0_i32_0 = arith.constant 0 : i32
    %c0_i32_1 = arith.constant 0 : i32
    return %c0_i32, %c0_i32_0 : i32, i32
  }
  func.func @transform_8(%arg0: i32, %arg1: i32, %arg2: memref<2xi32, #tpu.memory_space<smem>>) -> (i32, i32, i32) {
    %c0_i32 = arith.constant 0 : i32
    %c0_i32_0 = arith.constant 0 : i32
    %c0_i32_1 = arith.constant 0 : i32
    return %arg0, %c0_i32, %c0_i32_0 : i32, i32, i32
  }
}

</mosaic_0001>

<bundles_post_ra>
// kernel: tpu_custom_call.1
= control target key start
LH: loop header
LB: loop body
LE: loop exit
PB: predicated region body
PF: predicated region fallthrough
CT: control target
= control target key end

     0   :  { %s10070_s0 = inlined_call_operand.vmem [shape: s32[2], index: 0, kind: input, shape index: {}]   ;;  %s10071_s1 = inlined_call_operand.vmem [shape: f32[2,8,32], index: 1, kind: input, shape index: {}]   ;;  %s10072_s2 = inlined_call_operand.vmem [shape: f32[2,32,96], index: 2, kind: input, shape index: {}]   ;;  %s10073_s3 = inlined_call_operand.vmem [shape: f32[2,32,32], index: 3, kind: input, shape index: {}]   ;;  %s10074_s4 = inlined_call_operand.vmem [shape: f32[2,32,128], index: 4, kind: input, shape index: {}]   ;;  %s10075_s5 = inlined_call_operand.vmem [shape: f32[2,128,32], index: 5, kind: input, shape index: {}]   ;;  %s10076_s6 = inlined_call_operand.vmem [shape: f32[2,8,128], index: 6, kind: input, shape index: {}]   ;;  %s10077_s7 = inlined_call_operand.vmem [shape: f32[2,32], index: 7, kind: input, shape index: {}]   ;;  %s10078_s8 = inlined_call_operand.vmem [shape: f32[32,128], index: 8, kind: input, shape index: {}]   ;;  %s10079_s9 = inlined_call_operand.hbm [shape: f32[2,1,128], index: 9, kind: output, shape index: {}]  }
   0x1   :  { %10086 = sst [smem:[#allocation17_spill]] %s10071_s1  ;;  %s14_s11 = sshll.u32 %s10070_s0, 4  ;;  %s15_s11 = int_to_ptr.vmem [resolvable:$true] %s14_s11 }
   0x2   :  { %s9072_s12 = scalar_lea.vmem %s15_s11, 16  ;;  %p9077_p1 = scmp.lt.s32.totalorder %s15_s11, %s15_s11 }
   0x3   :  { %p9073_p0 = scmp.ne.s32.totalorder %s15_s11, %s9072_s12  ;;  %p9078_p2 = scmp.lt.s32.totalorder %s9072_s12, %s9072_s12 }
   0x5   :  { %p9079_p3 = por %p9078_p2, %p9077_p1 }
   0x7   :  { %p9080_p4 = pnand %p9079_p3, %p9073_p0 }
   0x9   :  { %9083 = shalt.err (!%p9080_p4)  }
   0xa   :  { %s9182_s13 = smov [#allocation4]  }
   0xb   :  { %17 = dma.vmem_to_smem %s15_s11, 16, %s9182_s13, [#allocation3] }
   0xc   :  { %9144 = dma.done.wait [#allocation3], 16 }
   0xd   :  { %9145 = vsyncadd [#allocation3], 4294967280 }
   0xe   :  { %19 = sfence }
   0xf   :  { %20 = vsyncpa [#allocation6], 0 }
  0x10   :  { %22 = vsyncpa [#allocation6 + $0x1], 0  ;;  %s9258_s14 = smov 0   ;;  %s9260_s15 = smov 0  }
  0x11   :  { %s9262_s0 = smov 0   ;;  %s9264_s16 = smov 0  }
  0x12   :  { %s9266_s17 = smov 0   ;;  %s9268_s18 = smov 0  }
  0x13   :  { %s9270_s19 = smov 0   ;;  %s9272_s20 = smov 0  }
  0x14 LB: > { %10087 = sst [smem:[#allocation9_spill]] %s9152_s14  ;;  %s7436_s21 = sadd.s32 4294967295, %s9180_s20   ;;  %s9180_s20 = sphi %s9272_s20, %s28_s20   ;;  %s9176_s19 = sphi %s9270_s19, %s10107_s19   ;;  %s9172_s18 = sphi %s9268_s18, %s10106_s18   ;;  %s9168_s17 = sphi %s9266_s17, %s10105_s17   ;;  %s9164_s16 = sphi %s9264_s16, %s10104_s16   ;;  %s9160_s0 = sphi %s9262_s0, %s10103_s0   ;;  %s9156_s15 = sphi %s9260_s15, %s10109_s15   ;;  %s9152_s14 = sphi %s9258_s14, %s10108_s14  }
  0x15   : > { %10088 = sst [smem:[#allocation10_spill]] %s9160_s0  ;;  %s7437_s22 = sadd.s32 4294967294, %s9180_s20  }
  0x16   : > { %10089 = sst [smem:[#allocation11_spill]] %s9172_s18  ;;  %s37_s23 = sadd.s32 1, %s9172_s18 }
  0x17   : > { %10090 = sst [smem:[#allocation12_spill]] %s9176_s19  ;;  %p38_p5 = scmp.ge.s32.totalorder %s37_s23, 2 }
  0x18   : > { %s40_s24 = sadd.s32 1, %s9176_s19  ;;  %p255_p6 = scmp.ne.s32.totalorder %s9160_s0, %s9156_s15 }
  0x19   : > { %p256_p7 = scmp.eq.s32.totalorder %s7436_s21, 3  ;;  %s10111_s23 = smov (%p38_p5, %s37_s23), 0 }
  0x1a   : > { %10091 = sst [smem:[#allocation13_spill]] %s10111_s23  ;;  %s10113_s24 = smov (!%p38_p5, %s40_s24), %s9176_s19 }
  0x1b   : > { %p9307_p8 = por %p256_p7, %p255_p6  ;;  %p261_p9 = scmp.ne.s32.totalorder %s9156_s15, %s9152_s14 }
  0x1c   : > { %p42_p10 = scmp.ge.s32.totalorder %s10113_s24, 2  ;;  %p262_p11 = scmp.eq.s32.totalorder %s7437_s22, 3 }
  0x1d   : > { %p7440_p12 = scmp.ge.s32.totalorder %s9180_s20, 1  ;;  %p332_p13 = scmp.lt.s32.totalorder %s9180_s20, 5 }
  0x1e   : > { %s10115_s24 = smov (%p42_p10, %s10113_s24), 0  ;;  %p9317_p0 = por %p262_p11, %p261_p9 }
  0x1f   : > { %10093 = sst [smem:[#allocation14_spill]] %s10115_s24  ;;  %p333_p1 = pnand %p7440_p12, %p332_p13 }
  0x20   : > { %s10094_s26 = scalar_select %p9317_p0, 1, 0 }
  0x21   : > { %s242_s27 = ssub.s32 %s9176_s19, %s10115_s24  ;;  %s245_s28 = sadd.s32 1, %s9160_s0 }
  0x22   : > { %10095 = sst [smem:[#allocation15_spill]] %s10094_s26  ;;  %p243_p2 = scmp.eq.s32.totalorder %s242_s27, 0 }
  0x23   : > { %336 = sbr.rel (%p333_p1) target bundleno = 3898 (0xf3a), region = 52  ;;  %p388_p3 = scmp.lt.s32.totalorder (!%p333_p1), %s9168_s17, 1 }
  0x24   : > { %s9325_s29 = scalar_select %p243_p2, %s9160_s0, %s245_s28  }
  0x25   : > { %p392_p4 = scmp.lt.s32.totalorder (!%p333_p1), %s9164_s16, 1  ;;  %s10097_s1 = sld [smem:[#allocation17_spill]] (!%p333_p1) }
  0x26   : > { %10096 = sst [smem:[#allocation16_spill]] %s9325_s29  ;;  %s10098_s18 = sand.u32 (!%p333_p1), 1, %s9156_s15  }
  0x27   : > { %s9362_s19 = scalar_lea.vmem (!%p333_p1), [#allocation5], %s10098_s18  ;;  %p7451_p5 = scmp.ne.s32.totalorder (!%p333_p1), %s9164_s16, 0 }
  0x2a   : > { %s389_s10 = scalar_select %p388_p3, %s9168_s17, 1 }
  0x2b   : > { %s393_s11 = scalar_select %p392_p4, %s9164_s16, 1 }
  0x2c   : > { %s7441_s12 = sshll.u32 %s389_s10, 3  ;;  %419 = sbr.rel (%p7451_p5) target bundleno = 51 (0x33), region = 56  ;;  %vm421_vm0 = vcmask (!%p7451_p5), 261120  }
  0x2d   : > { %s391_s22 = scalar_lea.vmem %s10097_s1, %s7441_s12  ;;  %s7461_s27 = sshll.u32 %s393_s11, 5 }
  0x2e   : > { %s9338_s23 = scalar_lea.vmem %s10072_s2, %s7461_s27  ;;  %s9343_s29 = scalar_lea.vmem %s10073_s3, %s7461_s27  ;;  %v420_v0 = vld [vmem:[%s391_s22] sm:$0xff] (!%p7451_p5) }
  0x2f   : > { %s9348_s26 = scalar_lea.vmem %s10074_s4, %s7461_s27  ;;  %s7464_s10 = sshll.u32 %s393_s11, 7  ;;  %422 = vst.msk [vmem:[#allocation2] sm:$0xff] (!%p7451_p5), %vm421_vm0, %v420_v0 }
  0x30   : > { %s9353_s12 = scalar_lea.vmem %s10075_s5, %s7464_s10  ;;  %s7450_s21 = sshll.u32 %s393_s11, 3 }
  0x31   : > { %s9358_s1 = scalar_lea.vmem %s10076_s6, %s7450_s21 }
  0x33 PF: > { %vm425_vm1 = vcmask 261120   ;;  %v450_v8 = vld [vmem:[%s9338_s23] sm:$0xff]  ;;  %v451_v9 = vld [vmem:[%s9338_s23 + $0x8] sm:$0xff]  ;;  %v452_v10 = vld [vmem:[%s9338_s23 + $0x10] sm:$0xff]  ;;  %v9183_v11 = vmov 0.0|0.0   ;;  %vm9184_vm2 = vmmov 0   ;;  %v440_v44 = vlaneseq }
  0x34   : > { %8539 = vmatprep.subr.bf16.mxu0 %v9183_v11  ;;  %v462_v12 = vand.u32 4294901760, %v450_v8  ;;  %v465_v13 = vand.u32 4294901760, %v451_v9  ;;  %v453_v14 = vld [vmem:[%s9338_s23 + $0x18] sm:$0xff]  ;;  %v468_v15 = vand.u32 4294901760, %v452_v10  ;;  %v9185_v16 = vmov 0.0   ;;  %v423_v48 = vld [vmem:[%s9358_s1] sm:$0xff] }
  0x35   : > { %7803 = vmatprep.mubr.msk.f32.mxu0 %vm9184_vm2, %v9185_v16  ;;  %v471_v17 = vand.u32 4294901760, %v453_v14  ;;  %7861 = vmatprep.subr.mxu1 %v9185_v16  ;;  %v9386_v46 = vshrl.u32 %v440_v44, 7  ;;  %s9186_s14 = smov 88   ;;  %s9187_s0 = smov 96   ;;  %vm956_vm3 = vcmask 64512   ;;  %vm4635_vm5 = vcmask 130048  }
  0x36   : > { %v424_v1 = vld [vmem:[#allocation2] sm:$0xff]  ;;  %7863 = vmatprep.mubr.msk.f32.mxu1 %vm9184_vm2, %v9185_v16  ;;  %v9377_v18 = vpack.c.bf16 %v465_v13, %v462_v12  ;;  %v542_v19 = vsub.f32 %v450_v8, %v462_v12  ;;  %v549_v20 = vsub.f32 %v451_v9, %v465_v13  ;;  %v556_v21 = vsub.f32 %v452_v10, %v468_v15  ;;  %s9188_s23 = smov 120   ;;  %s9189_s30 = smov 112  }
  0x37   : > { %v426_v2 = vsel %vm425_vm1, %v424_v1, 0.0  ;;  %v563_v22 = vsub.f32 %v453_v14, %v471_v17  ;;  %v9380_v23 = vpack.c.bf16 %v471_v17, %v468_v15  ;;  %v442_v47 = vsub.s32 0, %v9386_v46  ;;  %s9190_s11 = smov 80   ;;  %s9191_s22 = smov 104  }
  0x38   : > { %427 = vadd.xlane.f32.xlu0 %v426_v2  ;;  %8541 = vmatpush3.bf16.msra.mxu0 %v9377_v18  ;;  %v543_v24 = vand.u32 4294901760, %v542_v19  ;;  %v550_v25 = vand.u32 4294901760, %v549_v20  ;;  %v557_v30 = vand.u32 4294901760, %v556_v21  ;;  %v8552_v38 = vpack.c.bf16 %v549_v20, %v542_v19  ;;  %s9192_s27 = smov 72   ;;  %s9194_s10 = smov 64  }
  0x39   : > { %8542 = vmatprep.subr.bf16.mxu0 %v9183_v11  ;;  %v564_v31 = vand.u32 4294901760, %v563_v22  ;;  %v8555_v39 = vpack.c.bf16 %v563_v22, %v556_v21  ;;  %v447_v49 = vsub.s32 1, %v9386_v46  ;;  %v443_v50 = vrot.slane %v423_v48, %v442_v47  ;;  %s9195_s13 = smov 56   ;;  %s9196_s21 = smov 48  }
  0x3a   : > { %v544_v26 = vsub.f32 %v542_v19, %v543_v24  ;;  %v551_v27 = vsub.f32 %v549_v20, %v550_v25  ;;  %v558_v33 = vsub.f32 %v556_v21, %v557_v30  ;;  %v8564_v40 = vpack.c.bf16 %v550_v25, %v543_v24  ;;  %s9197_s24 = smov 40   ;;  %s9198_s28 = smov 8  }
  0x3b   : > { %v565_v34 = vsub.f32 %v563_v22, %v564_v31  ;;  %v8567_v41 = vpack.c.bf16 %v564_v31, %v557_v30  ;;  %v448_v53 = vrot.slane %v423_v48, %v447_v49  ;;  %v456_v62 = vsub.s32 7, %v9386_v46  ;;  %s9199_s18 = smov 16   ;;  %p7453_p6 = scmp.ne.s32.totalorder %s9164_s16, 1 }
  0x3c   : > { %8544 = vmatpush3.bf16.msra.mxu0 %v9380_v23  ;;  %v545_v28 = vand.u32 4294901760, %v544_v26  ;;  %v552_v29 = vand.u32 4294901760, %v551_v27  ;;  %v559_v35 = vand.u32 4294901760, %v558_v33  ;;  %vm4637_vm6 = vcmask 195584  }
  0x3d   : > { %8545 = vmatprep.subr.bf16.mxu0 %v9183_v11  ;;  %v566_v36 = vand.u32 4294901760, %v565_v34  ;;  %v457_v63 = vrot.slane %v423_v48, %v456_v62  ;;  %vm9202_vm7 = vmmov (!%p7453_p6), 0   ;;  %vm6788_vm9 = vcmask (!%p7453_p6), 253952  }
  0x3e   : > { %v8546_v32 = vpack.c.bf16 %v552_v29, %v545_v28 }
  0x3f   : > { %v8549_v37 = vpack.c.bf16 %v566_v36, %v559_v35 }
  0xc5   : > { %v428_v3 = vpop.xlane.xlu0 %427 }
  0xc6   : > { %v430_v4 = vmul.f32 0.03125, %v428_v3 }
  0xc8   : > { %v431_v5 = vsub.f32 %v424_v1, %v430_v4 }
  0xca   : > { %v432_v6 = vmul.f32 %v431_v5, %v431_v5 }
  0xcc   : > { %v433_v7 = vsel %vm425_vm1, %v432_v6, 0.0 }
  0xcd   : > { %434 = vadd.xlane.f32.xlu0 %v433_v7 }
 0x15a   : > { %v435_v42 = vpop.xlane.xlu0 %434 }
 0x15b   : > { %v436_v43 = vmul.f32 0.03125, %v435_v42 }
 0x15d   : > { %v437_v45 = vadd.f32 1e-05, %v436_v43 }
 0x15f   : > { %9044 = vrsqrt.f32 %v437_v45 }
 0x169   : > { %v9045_v51 = vpop.eup %9044 }
 0x16a   : > { %v439_v52 = vmul.f32 %v9045_v51, %v431_v5 }
 0x16c   : > { %v444_v54 = vmul.f32 %v443_v50, %v439_v52 }
 0x16e   : > { %v449_v55 = vadd.f32 %v448_v53, %v444_v54 }
 0x170   : > { %v459_v56 = vsel %vm425_vm1, %v449_v55, 0 }
 0x171   : > { %v530_v57 = vand.u32 4294901760, %v459_v56 }
 0x173   : > { %v531_v58 = vsub.f32 %v459_v56, %v530_v57 }
 0x175   : > { %v532_v59 = vand.u32 4294901760, %v531_v58 }
 0x177   : > { %v533_v60 = vsub.f32 %v531_v58, %v532_v59 }
 0x179   : > { %v534_v61 = vand.u32 4294901760, %v533_v60 }
 0x17b   : > { %7804 = vmatmul.mubr.f32.vlgmr.msra.gmra.mrb[0].mxu0 %v534_v61 }
 0x17c   : > { %8547 = vmatpush3.bf16.msra.mxu0 %v8546_v32  ;;  %7814 = vmatprep.mubr.msk.f32.mxu0 %vm9184_vm2, %v9185_v16 }
 0x17d   : > { %8548 = vmatprep.subr.bf16.mxu0 %v9183_v11 }
 0x180   : > { %8550 = vmatpush3.bf16.msra.mxu0 %v8549_v37 }
 0x181   : > { %8551 = vmatprep.subr.bf16.mxu0 %v9183_v11 }
 0x183   : > { %7815 = vmatmul.mubr.f32.vlgmr.msra.gmra.mrb[0].mxu0 %v530_v57 }
 0x184   : > { %8553 = vmatpush3.bf16.msra.mxu0 %v8552_v38  ;;  %7825 = vmatprep.mubr.msk.f32.mxu0 %vm9184_vm2, %v9185_v16 }
 0x185   : > { %8554 = vmatprep.subr.bf16.mxu0 %v9183_v11 }
 0x188   : > { %8556 = vmatpush3.bf16.msra.mxu0 %v8555_v39 }
 0x189   : > { %8557 = vmatprep.subr.bf16.mxu0 %v9183_v11 }
 0x18b   : > { %7826 = vmatmul.mubr.f32.vlgmr.msra.gmra.mrb[0].mxu0 %v531_v58 }
 0x18c   : > { %8559 = vmatpush3.bf16.msra.mxu0 %v9377_v18  ;;  %7836 = vmatprep.mubr.msk.f32.mxu0 %vm9184_vm2, %v9185_v16 }
 0x18d   : > { %8560 = vmatprep.subr.bf16.mxu0 %v9183_v11 }
 0x190   : > { %8562 = vmatpush3.bf16.msra.mxu0 %v9380_v23 }
 0x191   : > { %8563 = vmatprep.subr.bf16.mxu0 %v9183_v11 }
 0x193   : > { %7837 = vmatmul.mubr.f32.vlgmr.msra.gmra.mrb[0].mxu0 %v532_v59 }
 0x194   : > { %8565 = vmatpush3.bf16.msra.mxu0 %v8564_v40  ;;  %7847 = vmatprep.mubr.msk.f32.mxu0 %vm9184_vm2, %v9185_v16 }
 0x195   : > { %8566 = vmatprep.subr.bf16.mxu0 %v9183_v11 }
 0x198   : > { %8568 = vmatpush3.bf16.msra.mxu0 %v8567_v41 }
 0x199   : > { %8569 = vmatprep.subr.bf16.mxu0 %v9183_v11 }
 0x19b   : > { %7848 = vmatmul.mubr.f32.vlgmr.msra.gmra.mrb[0].mxu0 %v530_v57 }
 0x19c   : > { %8571 = vmatpush3.bf16.msra.mxu0 %v9377_v18  ;;  %7858 = vmatprep.mubr.msk.f32.mxu0 %vm9184_vm2, %v9185_v16 }
 0x19d   : > { %8572 = vmatprep.subr.bf16.mxu0 %v9183_v11 }
 0x1a0   : > { %8574 = vmatpush3.bf16.msra.mxu0 %v9380_v23 }
 0x1a1   : > { %7921 = vmatprep.subr.mxu0 %v9185_v16 }
 0x1a3   : > { %7859 = vmatmul.mubr.f32.vlgmr.msra.gmra.mrb[0].mxu0 %v530_v57 }
 0x1a4   : > { %7923 = vmatprep.mubr.msk.f32.mxu0 %vm9184_vm2, %v9185_v16 }
 0x276   : > { %v942_v0 = vpop.f32.mrb[0].mxu0 }
 0x277   : > { %v9419_v1 = vadd.f32 %v942_v0, %v457_v63  ;;  %v7860_v2 = vpop.f32.mrb[1].mxu0  ;;  %v9525_v63 = vand.u32 127, %v440_v44  ;;  %v9193_v0 = vmov -inf  }
 0x279   : > { %1873 = vrot.lane.b32.xlu0 %v9419_v1, %s9186_s14  ;;  %954 = vrot.lane.b32.xlu1 %v9419_v1, %s9187_s0  ;;  %v946_v3 = vmul.f32 0.35355338, %v9419_v1  ;;  %vm951_vm4 = vcmp.le.s32.totalorder %v9525_v63, %v9386_v46 }
 0x27a   : > { %v952_v2 = vsel %vm951_vm4, 0.0, %v9193_v0 }
 0x27b   : > { %v958_v4 = vsel %vm956_vm3, %v946_v3, 0 }
 0x27c   : > { %v9427_v5 = vand.u32 4294901760, %v958_v4 }
 0x27d   : > { %1871 = vrot.lane.b32.xlu1 %v946_v3, %s9188_s23 }
 0x27e   : > { %v1029_v6 = vsub.f32 %v958_v4, %v9427_v5 }
 0x280   : > { %v1030_v7 = vand.u32 4294901760, %v1029_v6 }
 0x281   : > { %2788 = vrot.lane.b32.xlu1 %v946_v3, %s9189_s30 }
 0x282   : > { %v1031_v13 = vsub.f32 %v1029_v6, %v1030_v7 }
 0x284   : > { %v1032_v21 = vand.u32 4294901760, %v1031_v13 }
 0x285   : > { %2790 = vrot.lane.b32.xlu1 %v9419_v1, %s9190_s11 }
 0x289   : > { %3705 = vrot.lane.b32.xlu1 %v946_v3, %s9191_s22 }
 0x28d   : > { %3707 = vrot.lane.b32.xlu1 %v9419_v1, %s9192_s27 }
 0x2eb   : > { %v1874_v8 = vpop.permute.xlu0 %1873  ;;  %v955_v9 = vpop.permute.xlu1 %954 }
 0x2ec   : > { %v1877_v10 = vsel %vm956_vm3, %v1874_v8, 0  ;;  %v960_v12 = vsel %vm956_vm3, %v955_v9, 0 }
 0x2ed   : > { %v9432_v14 = vand.u32 4294901760, %v1877_v10  ;;  %v963_v15 = vand.u32 4294901760, %v960_v12 }
 0x2ef   : > { %v1957_v17 = vsub.f32 %v1877_v10, %v9432_v14  ;;  %v1040_v18 = vsub.f32 %v960_v12, %v963_v15  ;;  %7862 = vmatpush3.xpose.msra.mxu1 %v963_v15  ;;  %7922 = vmatpush3.xpose.msra.mxu0 %v9432_v14  ;;  %v1872_v19 = vpop.permute.xlu1 %1871 }
 0x2f0   : > { %v1875_v20 = vsel %vm956_vm3, %v1872_v19, 0  ;;  %7866 = vmatprep.subr.mxu1 %v9185_v16  ;;  %7926 = vmatprep.subr.mxu0 %v9185_v16 }
 0x2f1   : > { %v1041_v22 = vand.u32 4294901760, %v1040_v18  ;;  %v9439_v23 = vand.u32 4294901760, %v1875_v20  ;;  %v1958_v24 = vand.u32 4294901760, %v1957_v17 }
 0x2f2   : > { %7864 = vmatmul.mubr.f32.vlgmr.msra.gmra.mrb[0].mxu1 %v1032_v21 }
 0x2f3   : > { %v1042_v25 = vsub.f32 %v1040_v18, %v1041_v22  ;;  %v1946_v26 = vsub.f32 %v1875_v20, %v9439_v23  ;;  %7868 = vmatprep.mubr.msk.f32.mxu1 %vm9184_vm2, %v9185_v16  ;;  %v1959_v29 = vsub.f32 %v1957_v17, %v1958_v24  ;;  %v2789_v33 = vpop.permute.xlu1 %2788 }
 0x2f4   : > { %v2792_v35 = vsel %vm956_vm3, %v2789_v33, 0 }
 0x2f5   : > { %v1043_v27 = vand.u32 4294901760, %v1042_v25  ;;  %v1947_v28 = vand.u32 4294901760, %v1946_v26  ;;  %v1960_v32 = vand.u32 4294901760, %v1959_v29  ;;  %v2862_v37 = vand.u32 4294901760, %v2792_v35 }
 0x2f7   : > { %v1948_v30 = vsub.f32 %v1946_v26, %v1947_v28  ;;  %7867 = vmatpush3.xpose.msra.mxu1 %v1043_v27  ;;  %v2791_v34 = vpop.permute.xlu1 %2790  ;;  %v2863_v39 = vsub.f32 %v2792_v35, %v2862_v37 }
 0x2f8   : > { %7871 = vmatprep.subr.mxu1 %v9185_v16  ;;  %v2794_v36 = vsel %vm956_vm3, %v2791_v34, 0 }
 0x2f9   : > { %v1949_v31 = vand.u32 4294901760, %v1948_v30  ;;  %v2797_v38 = vand.u32 4294901760, %v2794_v36  ;;  %v2864_v41 = vand.u32 4294901760, %v2863_v39 }
 0x2fa   : > { %7869 = vmatmul.mubr.f32.vlgmr.msra.gmra.mrb[0].mxu1 %v9427_v5 }
 0x2fb   : > { %7924 = vmatmul.mubr.f32.vlgmr.msra.gmra.mrb[2].mxu0 %v1949_v31  ;;  %7872 = vmatpush3.xpose.msra.mxu1 %v1040_v18  ;;  %v2874_v40 = vsub.f32 %v2794_v36, %v2797_v38  ;;  %v2865_v43 = vsub.f32 %v2863_v39, %v2864_v41  ;;  %v3706_v49 = vpop.permute.xlu1 %3705 }
 0x2fc   : > { %7927 = vmatpush3.xpose.msra.mxu0 %v1960_v32  ;;  %7873 = vmatprep.mubr.msk.f32.mxu1 %vm9184_vm2, %v9185_v16  ;;  %v3709_v51 = vsel %vm956_vm3, %v3706_v49, 0 }
 0x2fd   : > { %7876 = vmatprep.subr.mxu1 %v9185_v16  ;;  %7928 = vmatprep.mubr.msk.f32.mxu0 %vm9184_vm2, %v9185_v16  ;;  %v2875_v42 = vand.u32 4294901760, %v2874_v40  ;;  %v2866_v47 = vand.u32 4294901760, %v2865_v43  ;;  %v3779_v53 = vand.u32 4294901760, %v3709_v51 }
 0x2fe   : > { %7931 = vmatprep.subr.mxu0 %v9185_v16 }
 0x2ff   : > { %v2876_v45 = vsub.f32 %v2874_v40, %v2875_v42  ;;  %v3708_v50 = vpop.permute.xlu1 %3707  ;;  %v3780_v55 = vsub.f32 %v3709_v51, %v3779_v53 }
 0x300   : > { %v3711_v52 = vsel %vm956_vm3, %v3708_v50, 0 }
 0x301   : > { %v2877_v48 = vand.u32 4294901760, %v2876_v45  ;;  %v3714_v54 = vand.u32 4294901760, %v3711_v52  ;;  %v3781_v57 = vand.u32 4294901760, %v3780_v55 }
 0x302   : > { %7874 = vmatmul.mubr.f32.vlgmr.msra.gmra.mrb[0].mxu1 %v1029_v6 }
 0x303   : > { %7877 = vmatpush3.xpose.msra.mxu1 %v963_v15  ;;  %7929 = vmatmul.mubr.f32.vlgmr.msra.gmra.mrb[2].mxu0 %v9439_v23  ;;  %v3791_v56 = vsub.f32 %v3711_v52, %v3714_v54  ;;  %v3782_v59 = vsub.f32 %v3780_v55, %v3781_v57 }
 0x304   : > { %7932 = vmatpush3.xpose.msra.mxu0 %v1957_v17  ;;  %7878 = vmatprep.mubr.msk.f32.mxu1 %vm9184_vm2, %v9185_v16 }
 0x305   : > { %7881 = vmatprep.subr.mxu1 %v9185_v16  ;;  %7933 = vmatprep.mubr.msk.f32.mxu0 %vm9184_vm2, %v9185_v16  ;;  %v3792_v58 = vand.u32 4294901760, %v3791_v56  ;;  %v3783_v61 = vand.u32 4294901760, %v3782_v59 }
 0x306   : > { %7936 = vmatprep.subr.mxu0 %v9185_v16 }
 0x307   : > { %v3793_v60 = vsub.f32 %v3791_v56, %v3792_v58 }
 0x309   : > { %v3794_v62 = vand.u32 4294901760, %v3793_v60 }
 0x30a   : > { %7879 = vmatmul.mubr.f32.vlgmr.msra.gmra.mrb[0].mxu1 %v1030_v7 }
 0x30b   : > { %7882 = vmatpush3.xpose.msra.mxu1 %v1041_v22  ;;  %7934 = vmatmul.mubr.f32.vlgmr.msra.gmra.mrb[2].mxu0 %v1946_v26 }
 0x30c   : > { %7937 = vmatpush3.xpose.msra.mxu0 %v9432_v14  ;;  %7883 = vmatprep.mubr.msk.f32.mxu1 %vm9184_vm2, %v9185_v16 }
 0x30d   : > { %7886 = vmatprep.subr.mxu1 %v9185_v16  ;;  %7938 = vmatprep.mubr.msk.f32.mxu0 %vm9184_vm2, %v9185_v16 }
 0x30e   : > { %7941 = vmatprep.subr.mxu0 %v9185_v16 }
 0x312   : > { %7884 = vmatmul.mubr.f32.vlgmr.msra.gmra.mrb[0].mxu1 %v9427_v5 }
 0x313   : > { %7887 = vmatpush3.xpose.msra.mxu1 %v963_v15  ;;  %7939 = vmatmul.mubr.f32.vlgmr.msra.gmra.mrb[2].mxu0 %v1947_v28 }
 0x314   : > { %7942 = vmatpush3.xpose.msra.mxu0 %v1958_v24  ;;  %7888 = vmatprep.mubr.msk.f32.mxu1 %vm9184_vm2, %v9185_v16 }
 0x315   : > { %7943 = vmatprep.mubr.msk.f32.mxu0 %vm9184_vm2, %v9185_v16  ;;  %7946 = vmatprep.subr.mxu0 %v9185_v16 }
 0x316   : > { %7891 = vmatprep.subr.mxu1 %v9185_v16 }
 0x31a   : > { %7889 = vmatmul.mubr.f32.vlgmr.msra.gmra.mrb[0].mxu1 %v9427_v5 }
 0x31b   : > { %7944 = vmatmul.mubr.f32.vlgmr.msra.gmra.mrb[2].mxu0 %v9439_v23  ;;  %7893 = vmatprep.mubr.msk.f32.mxu1 %vm9184_vm2, %v9185_v16 }
 0x31c   : > { %7947 = vmatpush3.xpose.msra.mxu0 %v9432_v14  ;;  %7948 = vmatprep.mubr.msk.f32.mxu0 %vm9184_vm2, %v9185_v16 }
 0x31d   : > { %7981 = vmatprep.subr.mxu0 %v9185_v16 }
 0x323   : > { %7949 = vmatmul.mubr.f32.vlgmr.msra.gmra.mrb[2].mxu0 %v9439_v23 }
 0x324   : > { %7982 = vmatpush3.xpose.msra.mxu0 %v2797_v38  ;;  %7983 = vmatprep.mubr.msk.f32.mxu0 %vm9184_vm2, %v9185_v16 }
 0x325   : > { %7986 = vmatprep.subr.mxu0 %v9185_v16 }
 0x327   : > { %7984 = vmatmul.mubr.f32.vlgmr.msra.gmra.mrb[4].mxu0 %v2866_v47 }
 0x328   : > { %7987 = vmatpush3.xpose.msra.mxu0 %v2877_v48  ;;  %7988 = vmatprep.mubr.msk.f32.mxu0 %vm9184_vm2, %v9185_v16 }
 0x329   : > { %7991 = vmatprep.subr.mxu0 %v9185_v16 }
 0x32f   : > { %7989 = vmatmul.mubr.f32.vlgmr.msra.gmra.mrb[4].mxu0 %v2862_v37 }
 0x330   : > { %7992 = vmatpush3.xpose.msra.mxu0 %v2874_v40  ;;  %7993 = vmatprep.mubr.msk.f32.mxu0 %vm9184_vm2, %v9185_v16 }
 0x331   : > { %7996 = vmatprep.subr.mxu0 %v9185_v16 }
 0x337   : > { %7994 = vmatmul.mubr.f32.vlgmr.msra.gmra.mrb[4].mxu0 %v2863_v39 }
 0x338   : > { %7997 = vmatpush3.xpose.msra.mxu0 %v2797_v38  ;;  %7998 = vmatprep.mubr.msk.f32.mxu0 %vm9184_vm2, %v9185_v16 }
 0x339   : > { %8001 = vmatprep.subr.mxu0 %v9185_v16 }
 0x33f   : > { %7999 = vmatmul.mubr.f32.vlgmr.msra.gmra.mrb[4].mxu0 %v2864_v41 }
 0x340   : > { %8002 = vmatpush3.xpose.msra.mxu0 %v2875_v42  ;;  %8003 = vmatprep.mubr.msk.f32.mxu0 %vm9184_vm2, %v9185_v16 }
 0x341   : > { %8006 = vmatprep.subr.mxu0 %v9185_v16 }
 0x347   : > { %8004 = vmatmul.mubr.f32.vlgmr.msra.gmra.mrb[4].mxu0 %v2862_v37 }
 0x348   : > { %8007 = vmatpush3.xpose.msra.mxu0 %v2797_v38  ;;  %8008 = vmatprep.mubr.msk.f32.mxu0 %vm9184_vm2, %v9185_v16 }
 0x349   : > { %8041 = vmatprep.subr.mxu0 %v9185_v16 }
 0x34f   : > { %8009 = vmatmul.mubr.f32.vlgmr.msra.gmra.mrb[4].mxu0 %v2862_v37 }
 0x350   : > { %8042 = vmatpush3.xpose.msra.mxu0 %v3714_v54  ;;  %8043 = vmatprep.mubr.msk.f32.mxu0 %vm9184_vm2, %v9185_v16 }
 0x351   : > { %8046 = vmatprep.subr.mxu0 %v9185_v16 }
 0x353   : > { %8044 = vmatmul.mubr.f32.vlgmr.msra.gmra.mrb[6].mxu0 %v3783_v61 }
 0x354   : > { %8047 = vmatpush3.xpose.msra.mxu0 %v3794_v62  ;;  %8048 = vmatprep.mubr.msk.f32.mxu0 %vm9184_vm2, %v9185_v16 }
 0x355   : > { %8051 = vmatprep.subr.mxu0 %v9185_v16 }
 0x35b   : > { %8049 = vmatmul.mubr.f32.vlgmr.msra.gmra.mrb[6].mxu0 %v3779_v53 }
 0x35c   : > { %8052 = vmatpush3.xpose.msra.mxu0 %v3791_v56  ;;  %8053 = vmatprep.mubr.msk.f32.mxu0 %vm9184_vm2, %v9185_v16 }
 0x35d   : > { %8056 = vmatprep.subr.mxu0 %v9185_v16 }
 0x363   : > { %8054 = vmatmul.mubr.f32.vlgmr.msra.gmra.mrb[6].mxu0 %v3780_v55 }
 0x364   : > { %8057 = vmatpush3.xpose.msra.mxu0 %v3714_v54  ;;  %8058 = vmatprep.mubr.msk.f32.mxu0 %vm9184_vm2, %v9185_v16 }
 0x365   : > { %8061 = vmatprep.subr.mxu0 %v9185_v16 }
 0x36b   : > { %8059 = vmatmul.mubr.f32.vlgmr.msra.gmra.mrb[6].mxu0 %v3781_v57 }
 0x36c   : > { %8062 = vmatpush3.xpose.msra.mxu0 %v3792_v58  ;;  %8063 = vmatprep.mubr.msk.f32.mxu0 %vm9184_vm2, %v9185_v16 }
 0x36d   : > { %8066 = vmatprep.subr.mxu0 %v9185_v16 }
 0x373   : > { %8064 = vmatmul.mubr.f32.vlgmr.msra.gmra.mrb[6].mxu0 %v3779_v53 }
 0x374   : > { %8067 = vmatpush3.xpose.msra.mxu0 %v3714_v54  ;;  %8068 = vmatprep.mubr.msk.f32.mxu0 %vm9184_vm2, %v9185_v16 }
 0x375   : > { %8575 = vmatprep.subr.bf16.mxu0 %v9183_v11 }
 0x37b   : > { %8069 = vmatmul.mubr.f32.vlgmr.msra.gmra.mrb[6].mxu0 %v3779_v53 }
 0x37c   : > { %8109 = vmatprep.mubr.msk.f32.mxu0 %vm9184_vm2, %v9185_v16 }
 0x3ed   : > { %v1404_v3 = vpop.f32.mrb[0].mxu1 }
 0x3ee   : > { %v8828_v4 = vadd.f32 %v1404_v3, %v952_v2  ;;  %v7890_v5 = vpop.f32.mrb[1].mxu1 }
 0x3f0   : > { %v1408_v6 = vsel %vm956_vm3, %v8828_v4, -inf }
 0x3f1   : > { %1409 = vmax.xlane.f32.xlu1 %v1408_v6 }
 0x3f6   : > { %v2321_v7 = vpop.f32.mrb[2].mxu0 }
 0x3f7   : > { %v8829_v8 = vadd.f32 %v2321_v7, %v952_v2  ;;  %v7950_v9 = vpop.f32.mrb[3].mxu0 }
 0x3f9   : > { %v2325_v10 = vsel %vm956_vm3, %v8829_v8, -inf }
 0x3fa   : > { %2326 = vmax.xlane.f32.xlu0 %v2325_v10 }
 0x422   : > { %v3238_v12 = vpop.f32.mrb[4].mxu0 }
 0x423   : > { %v8830_v44 = vadd.f32 %v3238_v12, %v952_v2  ;;  %v8010_v13 = vpop.f32.mrb[5].mxu0 }
 0x425   : > { %v3242_v14 = vsel %vm956_vm3, %v8830_v44, -inf }
 0x426   : > { %3243 = vmax.xlane.f32.xlu0 %v3242_v14 }
 0x44e   : > { %v4155_v15 = vpop.f32.mrb[6].mxu0 }
 0x44f   : > { %v8070_v17 = vpop.f32.mrb[7].mxu0  ;;  %v8831_v27 = vadd.f32 %v4155_v15, %v952_v2 }
 0x451   : > { %v4159_v29 = vsel %vm956_vm3, %v8831_v27, -inf }
 0x47e   : > { %v1410_v18 = vpop.xlane.xlu1 %1409 }
 0x47f   : > { %v1411_v19 = vsub.f32 %v8828_v4, %v1410_v18 }
 0x481   : > { %v1412_v20 = vmul.f32 1.442695, %v1411_v19 }
 0x483   : > { %9046 = vpow2.f32 %v1412_v20 }
 0x487   : > { %v2327_v21 = vpop.xlane.xlu0 %2326 }
 0x488   : > { %v2328_v22 = vsub.f32 %v8829_v8, %v2327_v21 }
 0x48a   : > { %v2329_v23 = vmul.f32 1.442695, %v2328_v22 }
 0x48c   : > { %9048 = vpow2.f32 %v2329_v23 }
 0x48d   : > { %v9047_v24 = vpop.eup %9046 }
 0x48e   : > { %v1414_v25 = vsel %vm956_vm3, %v9047_v24, 0.0 }
 0x48f   : > { %1415 = vadd.xlane.f32.xlu1 %v1414_v25 }
 0x496   : > { %v9049_v26 = vpop.eup %9048 }
 0x497   : > { %v2331_v28 = vsel %vm956_vm3, %v9049_v26, 0.0 }
 0x498   : > { %2332 = vadd.xlane.f32.xlu0 %v2331_v28 }
 0x49c   : > { %4160 = vmax.xlane.f32.xlu0 %v4159_v29 }
 0x4a0   : > { %1419 = vrot.lane.b32.xlu1 %v9419_v1, %s9194_s10 }
 0x4b2   : > { %2336 = vrot.lane.b32.xlu0 %v9419_v1, %s9195_s13 }
 0x4b3   : > { %v3244_v30 = vpop.xlane.xlu0 %3243 }
 0x4b4   : > { %v3245_v31 = vsub.f32 %v8830_v44, %v3244_v30 }
 0x4b6   : > { %v3246_v32 = vmul.f32 1.442695, %v3245_v31  ;;  %3253 = vrot.lane.b32.xlu0 %v9419_v1, %s9196_s21 }
 0x4b8   : > { %9050 = vpow2.f32 %v3246_v32 }
 0x4c2   : > { %v9538_v33 = vpop.eup %9050 }
 0x4c3   : > { %v3248_v34 = vsel %vm956_vm3, %v9538_v33, 0.0 }
 0x4c4   : > { %3249 = vadd.xlane.f32.xlu1 %v3248_v34 }
 0x4d5   : > { %4170 = vrot.lane.b32.xlu1 %v9419_v1, %s9197_s24 }
 0x51c   : > { %v1416_v35 = vpop.xlane.xlu1 %1415 }
 0x51d   : > { %9052 = vrcp.f32 %v1416_v35 }
 0x520   : > { %v1420_v36 = vpop.permute.xlu1 %1419 }
 0x521   : > { %v1426_v37 = vand.u32 4294901760, %v1420_v36 }
 0x523   : > { %7892 = vmatpush3.msra.mxu1 %v1426_v37  ;;  %v1503_v41 = vsub.f32 %v1420_v36, %v1426_v37 }
 0x524   : > { %7896 = vmatprep.subr.mxu1 %v9185_v16 }
 0x525   : > { %v2333_v38 = vpop.xlane.xlu0 %2332  ;;  %v1504_v48 = vand.u32 4294901760, %v1503_v41 }
 0x527   : > { %v9053_v39 = vpop.eup %9052  ;;  %v1505_v51 = vsub.f32 %v1503_v41, %v1504_v48 }
 0x528   : > { %v1418_v40 = vmul.f32 %v9053_v39, %v9047_v24 }
 0x529   : > { %v4161_v42 = vpop.xlane.xlu0 %4160  ;;  %v1506_v54 = vand.u32 4294901760, %v1505_v51 }
 0x52a   : > { %v4162_v43 = vsub.f32 %v8831_v27, %v4161_v42  ;;  %v1423_v45 = vsel %vm956_vm3, %v1418_v40, 0 }
 0x52b   : > { %v1491_v47 = vand.u32 4294901760, %v1423_v45 }
 0x52c   : > { %v4163_v49 = vmul.f32 1.442695, %v4162_v43 }
 0x52d   : > { %v1492_v50 = vsub.f32 %v1423_v45, %v1491_v47  ;;  %v2337_v60 = vpop.permute.xlu0 %2336 }
 0x52e   : > { %9054 = vpow2.f32 %v4163_v49  ;;  %v2343_v62 = vand.u32 4294901760, %v2337_v60  ;;  %v4640_v49 = vld [vmem:[%s9343_s29 + $0x8] sm:$0xff] }
 0x52f   : > { %v1493_v1 = vand.u32 4294901760, %v1492_v50  ;;  %9056 = vrcp.f32 %v2333_v38 }
 0x530   : > { %v2420_v2 = vsub.f32 %v2337_v60, %v2343_v62 }
 0x531   : > { %v1494_v52 = vsub.f32 %v1492_v50, %v1493_v1  ;;  %v3254_v13 = vpop.permute.xlu0 %3253 }
 0x532   : > { %v2421_v4 = vand.u32 4294901760, %v2420_v2  ;;  %v3260_v15 = vand.u32 4294901760, %v3254_v13 }
 0x533   : > { %v1495_v53 = vand.u32 4294901760, %v1494_v52  ;;  %v4641_v52 = vld [vmem:[%s9343_s29 + $0x10] sm:$0xff] }
 0x534   : > { %v2422_v6 = vsub.f32 %v2420_v2, %v2421_v4  ;;  %v3337_v18 = vsub.f32 %v3254_v13, %v3260_v15 }
 0x535   : > { %7894 = vmatmul.mubr.f32.vlgmr.msra.gmra.mrb[2].mxu1 %v1495_v53  ;;  %v4642_v53 = vld [vmem:[%s9343_s29 + $0x18] sm:$0xff] }
 0x536   : > { %7897 = vmatpush3.msra.mxu1 %v1506_v54  ;;  %7898 = vmatprep.mubr.msk.f32.mxu1 %vm9184_vm2, %v9185_v16  ;;  %v2423_v8 = vand.u32 4294901760, %v2422_v6  ;;  %v3338_v20 = vand.u32 4294901760, %v3337_v18  ;;  %v4653_v54 = vand.u32 4294901760, %v4641_v52 }
 0x537   : > { %7901 = vmatprep.subr.mxu1 %v9185_v16 }
 0x538   : > { %v9548_v55 = vpop.eup %9054  ;;  %v3339_v22 = vsub.f32 %v3337_v18, %v3338_v20 }
 0x539   : > { %v4165_v56 = vsel %vm956_vm3, %v9548_v55, 0.0  ;;  %v9057_v57 = vpop.eup %9056 }
 0x53a   : > { %4166 = vadd.xlane.f32.xlu0 %v4165_v56  ;;  %v2335_v58 = vmul.f32 %v9057_v57, %v9049_v26  ;;  %v3340_v24 = vand.u32 4294901760, %v3339_v22 }
 0x53c   : > { %v2340_v59 = vsel %vm956_vm3, %v2335_v58, 0 }
 0x53d   : > { %7899 = vmatmul.mubr.f32.vlgmr.msra.gmra.mrb[2].mxu1 %v1491_v47  ;;  %v2408_v61 = vand.u32 4294901760, %v2340_v59 }
 0x53e   : > { %7902 = vmatpush3.msra.mxu1 %v1503_v41  ;;  %7903 = vmatprep.mubr.msk.f32.mxu1 %vm9184_vm2, %v9185_v16 }
 0x53f   : > { %7906 = vmatprep.subr.mxu1 %v9185_v16  ;;  %v2409_v0 = vsub.f32 %v2340_v59, %v2408_v61  ;;  %v4741_v59 = vsub.f32 %v4641_v52, %v4653_v54 }
 0x541   : > { %v2410_v3 = vand.u32 4294901760, %v2409_v0 }
 0x543   : > { %v2411_v5 = vsub.f32 %v2409_v0, %v2410_v3 }
 0x545   : > { %7904 = vmatmul.mubr.f32.vlgmr.msra.gmra.mrb[2].mxu1 %v1492_v50  ;;  %v2412_v7 = vand.u32 4294901760, %v2411_v5  ;;  %v4742_v5 = vand.u32 4294901760, %v4741_v59 }
 0x546   : > { %7907 = vmatpush3.msra.mxu1 %v1426_v37  ;;  %7908 = vmatprep.mubr.msk.f32.mxu1 %vm9184_vm2, %v9185_v16 }
 0x547   : > { %7911 = vmatprep.subr.mxu1 %v9185_v16 }
 0x54d   : > { %7909 = vmatmul.mubr.f32.vlgmr.msra.gmra.mrb[2].mxu1 %v1493_v1  ;;  %v4650_v1 = vand.u32 4294901760, %v4640_v49 }
 0x54e   : > { %7912 = vmatpush3.msra.mxu1 %v1504_v48  ;;  %7913 = vmatprep.mubr.msk.f32.mxu1 %vm9184_vm2, %v9185_v16  ;;  %v4639_v48 = vld [vmem:[%s9343_s29] sm:$0xff]  ;;  %s9200_s29 = smov 24  }
 0x54f   : > { %7916 = vmatprep.subr.mxu1 %v9185_v16  ;;  %v4647_v50 = vand.u32 4294901760, %v4639_v48  ;;  %v4734_v57 = vsub.f32 %v4640_v49, %v4650_v1 }
 0x551   : > { %v3250_v9 = vpop.xlane.xlu1 %3249  ;;  %v8576_v51 = vpack.c.bf16 %v4650_v1, %v4647_v50  ;;  %v4727_v56 = vsub.f32 %v4639_v48, %v4647_v50 }
 0x552   : > { %9058 = vrcp.f32 %v3250_v9 }
 0x553   : > { %8577 = vmatpush3.bf16.msra.mxu0 %v8576_v51 }
 0x554   : > { %8578 = vmatprep.subr.bf16.mxu0 %v9183_v11 }
 0x555   : > { %7914 = vmatmul.mubr.f32.vlgmr.msra.gmra.mrb[2].mxu1 %v1491_v47  ;;  %v4171_v25 = vpop.permute.xlu1 %4170 }
 0x556   : > { %7917 = vmatpush3.msra.mxu1 %v1426_v37  ;;  %7918 = vmatprep.mubr.msk.f32.mxu1 %vm9184_vm2, %v9185_v16  ;;  %v4177_v26 = vand.u32 4294901760, %v4171_v25 }
 0x557   : > { %7951 = vmatprep.subr.mxu1 %v9185_v16 }
 0x558   : > { %v4254_v29 = vsub.f32 %v4171_v25, %v4177_v26 }
 0x55c   : > { %v9059_v10 = vpop.eup %9058 }
 0x55d   : > { %7919 = vmatmul.mubr.f32.vlgmr.msra.gmra.mrb[2].mxu1 %v1491_v47  ;;  %v3252_v12 = vmul.f32 %v9059_v10, %v9538_v33  ;;  %v4255_v33 = vand.u32 4294901760, %v4254_v29 }
 0x55e   : > { %7952 = vmatpush3.msra.mxu1 %v2343_v62  ;;  %7953 = vmatprep.mubr.msk.f32.mxu1 %vm9184_vm2, %v9185_v16 }
 0x55f   : > { %7956 = vmatprep.subr.mxu1 %v9185_v16  ;;  %v3257_v44 = vsel %vm956_vm3, %v3252_v12, 0  ;;  %v4256_v36 = vsub.f32 %v4254_v29, %v4255_v33 }
 0x560   : > { %v3325_v14 = vand.u32 4294901760, %v3257_v44 }
 0x561   : > { %7954 = vmatmul.mubr.f32.vlgmr.msra.gmra.mrb[4].mxu1 %v2412_v7  ;;  %v4257_v39 = vand.u32 4294901760, %v4256_v36 }
 0x562   : > { %7957 = vmatpush3.msra.mxu1 %v2423_v8  ;;  %7958 = vmatprep.mubr.msk.f32.mxu1 %vm9184_vm2, %v9185_v16  ;;  %v3326_v17 = vsub.f32 %v3257_v44, %v3325_v14  ;;  %v4743_v8 = vsub.f32 %v4741_v59, %v4742_v5 }
 0x563   : > { %7961 = vmatprep.subr.mxu1 %v9185_v16 }
 0x564   : > { %v3327_v19 = vand.u32 4294901760, %v3326_v17  ;;  %v4744_v44 = vand.u32 4294901760, %v4743_v8 }
 0x566   : > { %v3328_v21 = vsub.f32 %v3326_v17, %v3327_v19 }
 0x568   : > { %v3329_v23 = vand.u32 4294901760, %v3328_v21 }
 0x569   : > { %7959 = vmatmul.mubr.f32.vlgmr.msra.gmra.mrb[4].mxu1 %v2408_v61 }
 0x56a   : > { %7962 = vmatpush3.msra.mxu1 %v2420_v2  ;;  %7963 = vmatprep.mubr.msk.f32.mxu1 %vm9184_vm2, %v9185_v16 }
 0x56b   : > { %7966 = vmatprep.subr.mxu1 %v9185_v16 }
 0x571   : > { %7964 = vmatmul.mubr.f32.vlgmr.msra.gmra.mrb[4].mxu1 %v2409_v0 }
 0x572   : > { %7967 = vmatpush3.msra.mxu1 %v2343_v62  ;;  %7968 = vmatprep.mubr.msk.f32.mxu1 %vm9184_vm2, %v9185_v16 }
 0x573   : > { %7971 = vmatprep.subr.mxu1 %v9185_v16 }
 0x579   : > { %7969 = vmatmul.mubr.f32.vlgmr.msra.gmra.mrb[4].mxu1 %v2410_v3 }
 0x57a   : > { %7972 = vmatpush3.msra.mxu1 %v2421_v4  ;;  %7973 = vmatprep.mubr.msk.f32.mxu1 %vm9184_vm2, %v9185_v16 }
 0x57b   : > { %7976 = vmatprep.subr.mxu1 %v9185_v16 }
 0x581   : > { %7974 = vmatmul.mubr.f32.vlgmr.msra.gmra.mrb[4].mxu1 %v2408_v61 }
 0x582   : > { %7977 = vmatpush3.msra.mxu1 %v2343_v62  ;;  %7978 = vmatprep.mubr.msk.f32.mxu1 %vm9184_vm2, %v9185_v16  ;;  %v4735_v62 = vand.u32 4294901760, %v4734_v57 }
 0x583   : > { %8011 = vmatprep.subr.mxu1 %v9185_v16 }
 0x584   : > { %v4736_v2 = vsub.f32 %v4734_v57, %v4735_v62 }
 0x586   : > { %v4737_v4 = vand.u32 4294901760, %v4736_v2  ;;  %v5162_v2 = vld [vmem:[%s9348_s26 + $0x10] sm:$0xff] }
 0x589   : > { %7979 = vmatmul.mubr.f32.vlgmr.msra.gmra.mrb[4].mxu1 %v2408_v61  ;;  %v4728_v61 = vand.u32 4294901760, %v4727_v56 }
 0x58a   : > { %8012 = vmatpush3.msra.mxu1 %v3260_v15  ;;  %8013 = vmatprep.mubr.msk.f32.mxu1 %vm9184_vm2, %v9185_v16 }
 0x58b   : > { %8016 = vmatprep.subr.mxu1 %v9185_v16  ;;  %v4729_v0 = vsub.f32 %v4727_v56, %v4728_v61 }
 0x58d   : > { %8014 = vmatmul.mubr.f32.vlgmr.msra.gmra.mrb[6].mxu1 %v3329_v23  ;;  %v4730_v3 = vand.u32 4294901760, %v4729_v0  ;;  %v5161_v0 = vld [vmem:[%s9348_s26 + $0x8] sm:$0xff] }
 0x58e   : > { %8017 = vmatpush3.msra.mxu1 %v3340_v24  ;;  %8018 = vmatprep.mubr.msk.f32.mxu1 %vm9184_vm2, %v9185_v16 }
 0x58f   : > { %8021 = vmatprep.subr.mxu1 %v9185_v16  ;;  %v8582_v7 = vpack.c.bf16 %v4737_v4, %v4730_v3  ;;  %v5175_v4 = vand.u32 4294901760, %v5161_v0 }
 0x595   : > { %8019 = vmatmul.mubr.f32.vlgmr.msra.gmra.mrb[6].mxu1 %v3325_v14 }
 0x596   : > { %8022 = vmatpush3.msra.mxu1 %v3337_v18  ;;  %8023 = vmatprep.mubr.msk.f32.mxu1 %vm9184_vm2, %v9185_v16  ;;  %v8600_v18 = vpack.c.bf16 %v4735_v62, %v4728_v61  ;;  %v5160_v62 = vld [vmem:[%s9348_s26] sm:$0xff] }
 0x597   : > { %8026 = vmatprep.subr.mxu1 %v9185_v16  ;;  %v5172_v3 = vand.u32 4294901760, %v5160_v62 }
 0x599   : > { %v9670_v8 = vpack.c.bf16 %v5175_v4, %v5172_v3 }
 0x59d   : > { %8024 = vmatmul.mubr.f32.vlgmr.msra.gmra.mrb[6].mxu1 %v3326_v17 }
 0x59e   : > { %8027 = vmatpush3.msra.mxu1 %v3260_v15  ;;  %8028 = vmatprep.mubr.msk.f32.mxu1 %vm9184_vm2, %v9185_v16 }
 0x59f   : > { %8031 = vmatprep.subr.mxu1 %v9185_v16 }
 0x5a5   : > { %8029 = vmatmul.mubr.f32.vlgmr.msra.gmra.mrb[6].mxu1 %v3327_v19 }
 0x5a6   : > { %8032 = vmatpush3.msra.mxu1 %v3338_v20  ;;  %8033 = vmatprep.mubr.msk.f32.mxu1 %vm9184_vm2, %v9185_v16 }
 0x5a7   : > { %8036 = vmatprep.subr.mxu1 %v9185_v16 }
 0x5ad   : > { %8034 = vmatmul.mubr.f32.vlgmr.msra.gmra.mrb[6].mxu1 %v3325_v14 }
 0x5ae   : > { %8037 = vmatpush3.msra.mxu1 %v3260_v15  ;;  %8038 = vmatprep.mubr.msk.f32.mxu1 %vm9184_vm2, %v9185_v16  ;;  %v8588_v15 = vpack.c.bf16 %v4734_v57, %v4727_v56 }
 0x5af   : > { %8071 = vmatprep.subr.mxu1 %v9185_v16 }
 0x5b5   : > { %8039 = vmatmul.mubr.f32.vlgmr.msra.gmra.mrb[6].mxu1 %v3325_v14 }
 0x5b6   : > { %8072 = vmatpush3.msra.mxu1 %v4177_v26  ;;  %8073 = vmatprep.mubr.msk.f32.mxu1 %vm9184_vm2, %v9185_v16 }
 0x5b7   : > { %8076 = vmatprep.subr.mxu1 %v9185_v16 }
 0x5c7   : > { %v4167_v27 = vpop.xlane.xlu0 %4166 }
 0x5c8   : > { %9060 = vrcp.f32 %v4167_v27 }
 0x5d2   : > { %v9061_v28 = vpop.eup %9060 }
 0x5d3   : > { %v4169_v30 = vmul.f32 %v9061_v28, %v9548_v55  ;;  %v4656_v55 = vand.u32 4294901760, %v4642_v53 }
 0x5d5   : > { %v4174_v31 = vsel %vm956_vm3, %v4169_v30, 0  ;;  %v8579_v58 = vpack.c.bf16 %v4656_v55, %v4653_v54  ;;  %v4748_v60 = vsub.f32 %v4642_v53, %v4656_v55  ;;  %v9069_v53 = vld [vmem:[#allocation2] sm:$0xff] }
 0x5d6   : > { %v4242_v32 = vand.u32 4294901760, %v4174_v31 }
 0x5d7   : > { %8580 = vmatpush3.bf16.msra.mxu0 %v8579_v58  ;;  %v4749_v6 = vand.u32 4294901760, %v4748_v60  ;;  %v8591_v17 = vpack.c.bf16 %v4748_v60, %v4741_v59 }
 0x5d8   : > { %v4243_v34 = vsub.f32 %v4174_v31, %v4242_v32  ;;  %8581 = vmatprep.subr.bf16.mxu0 %v9183_v11 }
 0x5d9   : > { %v4750_v9 = vsub.f32 %v4748_v60, %v4749_v6  ;;  %v8603_v19 = vpack.c.bf16 %v4749_v6, %v4742_v5  ;;  %v5163_v5 = vld [vmem:[%s9348_s26 + $0x18] sm:$0xff]  ;;  %v5178_v6 = vand.u32 4294901760, %v5162_v2 }
 0x5da   : > { %v4244_v35 = vand.u32 4294901760, %v4243_v34 }
 0x5db   : > { %v4751_v13 = vand.u32 4294901760, %v4750_v9  ;;  %v5252_v9 = vsub.f32 %v5160_v62, %v5172_v3 }
 0x5dc   : > { %v4245_v37 = vsub.f32 %v4243_v34, %v4244_v35 }
 0x5dd   : > { %v8585_v14 = vpack.c.bf16 %v4751_v13, %v4744_v44 }
 0x5de   : > { %v4246_v38 = vand.u32 4294901760, %v4245_v37 }
 0x5e0   : > { %8074 = vmatmul.mubr.f32.vlgmr.msra.gmra.mrb[8].mxu1 %v4246_v38 }
 0x5e1   : > { %8077 = vmatpush3.msra.mxu1 %v4257_v39  ;;  %8078 = vmatprep.mubr.msk.f32.mxu1 %vm9184_vm2, %v9185_v16 }
 0x5e2   : > { %8081 = vmatprep.subr.mxu1 %v9185_v16 }
 0x5e8   : > { %8079 = vmatmul.mubr.f32.vlgmr.msra.gmra.mrb[8].mxu1 %v4242_v32 }
 0x5e9   : > { %8082 = vmatpush3.msra.mxu1 %v4254_v29  ;;  %8083 = vmatprep.mubr.msk.f32.mxu1 %vm9184_vm2, %v9185_v16 }
 0x5ea   : > { %8086 = vmatprep.subr.mxu1 %v9185_v16 }
 0x5f0   : > { %8084 = vmatmul.mubr.f32.vlgmr.msra.gmra.mrb[8].mxu1 %v4243_v34 }
 0x5f1   : > { %8087 = vmatpush3.msra.mxu1 %v4177_v26  ;;  %8088 = vmatprep.mubr.msk.f32.mxu1 %vm9184_vm2, %v9185_v16 }
 0x5f2   : > { %8091 = vmatprep.subr.mxu1 %v9185_v16 }
 0x5f8   : > { %8089 = vmatmul.mubr.f32.vlgmr.msra.gmra.mrb[8].mxu1 %v4244_v35 }
 0x5f9   : > { %8092 = vmatpush3.msra.mxu1 %v4255_v33  ;;  %8093 = vmatprep.mubr.msk.f32.mxu1 %vm9184_vm2, %v9185_v16 }
 0x5fa   : > { %8096 = vmatprep.subr.mxu1 %v9185_v16 }
 0x600   : > { %8094 = vmatmul.mubr.f32.vlgmr.msra.gmra.mrb[8].mxu1 %v4242_v32 }
 0x601   : > { %8097 = vmatpush3.msra.mxu1 %v4177_v26  ;;  %8098 = vmatprep.mubr.msk.f32.mxu1 %vm9184_vm2, %v9185_v16 }
 0x602   : > { %8593 = vmatprep.subr.bf16.mxu1 %v9183_v11 }
 0x608   : > { %8099 = vmatmul.mubr.f32.vlgmr.msra.gmra.mrb[8].mxu1 %v4242_v32 }
 0x609   : > { %8142 = vmatprep.mubr.msk.f32.mxu1 %vm9184_vm2, %v9185_v16  ;;  %8595 = vmatpush3.bf16.msra.mxu1 %v8576_v51 }
 0x60a   : > { %8596 = vmatprep.subr.bf16.mxu1 %v9183_v11 }
 0x60d   : > { %8598 = vmatpush3.bf16.msra.mxu1 %v8579_v58 }
 0x60e   : > { %8605 = vmatprep.subr.bf16.mxu1 %v9183_v11 }
 0x630   : > { %v1867_v40 = vpop.f32.mrb[2].mxu1 }
 0x631   : > { %v7920_v41 = vpop.f32.mrb[3].mxu1 }
 0x65c   : > { %v2784_v42 = vpop.f32.mrb[4].mxu1 }
 0x65d   : > { %4623 = vrot.lane.b32.xlu0 %v2784_v42, %s9198_s28  ;;  %v7980_v43 = vpop.f32.mrb[5].mxu1 }
 0x688   : > { %v3701_v45 = vpop.f32.mrb[6].mxu1 }
 0x689   : > { %4627 = vrot.lane.b32.xlu1 %v3701_v45, %s9199_s18  ;;  %v8040_v47 = vpop.f32.mrb[7].mxu1 }
 0x68a   : > { %v5134_v47 = vsub.s32 4, %v9386_v46 }
 0x6cf   : > { %v4624_v20 = vpop.permute.xlu0 %4623 }
 0x6d0   : > { %v4634_v22 = vsel %vm956_vm3, %v1867_v40, %v4624_v20 }
 0x6db   : > { %v4618_v10 = vpop.f32.mrb[8].mxu1 }
 0x6dc   : > { %4631 = vrot.lane.b32.xlu1 %v4618_v10, %s9200_s29  ;;  %v8100_v12 = vpop.f32.mrb[9].mxu1  ;;  %v5259_v10 = vsub.f32 %v5161_v0, %v5175_v4  ;;  %v5668_v4 = vld [vmem:[%s9353_s12 + $0x20] sm:$0xff] }
 0x6dd   : > { %v5266_v12 = vsub.f32 %v5162_v2, %v5178_v6 }
 0x6fb   : > { %v4628_v21 = vpop.permute.xlu1 %4627 }
 0x6fc   : > { %v4636_v23 = vsel %vm4635_vm5, %v4634_v22, %v4628_v21  ;;  %v5267_v21 = vand.u32 4294901760, %v5266_v12 }
 0x74e   : > { %v4632_v24 = vpop.permute.xlu1 %4631 }
 0x74f   : > { %v4638_v25 = vsel %vm4637_vm6, %v4636_v23, %v4632_v24  ;;  %v5268_v24 = vsub.f32 %v5266_v12, %v5267_v21 }
 0x750   : > { %v4644_v26 = vsel %vm425_vm1, %v4638_v25, 0 }
 0x751   : > { %v4715_v27 = vand.u32 4294901760, %v4644_v26 }
 0x753   : > { %v4716_v28 = vsub.f32 %v4644_v26, %v4715_v27  ;;  %v5269_v26 = vand.u32 4294901760, %v5268_v24 }
 0x755   : > { %v4717_v29 = vand.u32 4294901760, %v4716_v28 }
 0x757   : > { %8143 = vmatmul.mubr.f32.vlgmr.msra.gmra.mrb[10].mxu1 %v4717_v29  ;;  %v4718_v30 = vsub.f32 %v4716_v28, %v4717_v29  ;;  %v8624_v29 = vpack.c.bf16 %v5259_v10, %v5252_v9 }
 0x758   : > { %8607 = vmatpush3.bf16.msra.mxu1 %v8576_v51  ;;  %8164 = vmatprep.mubr.msk.f32.mxu1 %vm9184_vm2, %v9185_v16  ;;  %v9657_v51 = vld [vmem:[%s9358_s1] sm:$0xff]  ;;  %s6332_s1 = sld [smem:[#allocation4 + %s9168_s17]] (!%p7453_p6) }
 0x759   : > { %8608 = vmatprep.subr.bf16.mxu1 %v9183_v11  ;;  %v4719_v31 = vand.u32 4294901760, %v4718_v30  ;;  %v5135_v52 = vrot.slane %v9657_v51, %v5134_v47 }
 0x75b   : > { %8110 = vmatmul.mubr.f32.vlgmr.msra.gmra.mrb[8].mxu0 %v4719_v31 }
 0x75c   : > { %8583 = vmatpush3.bf16.msra.mxu0 %v8582_v7  ;;  %8610 = vmatpush3.bf16.msra.mxu1 %v8579_v58  ;;  %v5181_v7 = vand.u32 4294901760, %v5163_v5 }
 0x75d   : > { %8584 = vmatprep.subr.bf16.mxu0 %v9183_v11  ;;  %8120 = vmatprep.mubr.msk.f32.mxu0 %vm9184_vm2, %v9185_v16 }
 0x75e   : > { %8647 = vmatprep.subr.bf16.mxu1 %v9183_v11  ;;  %v5273_v44 = vsub.f32 %v5163_v5, %v5181_v7  ;;  %v9673_v13 = vpack.c.bf16 %v5181_v7, %v5178_v6  ;;  %v5669_v5 = vld [vmem:[%s9353_s12 + $0x28] sm:$0xff]  ;;  %v5693_v7 = vand.u32 4294901760, %v5668_v4 }
 0x75f   : > { %8165 = vmatmul.mubr.f32.vlgmr.msra.gmra.mrb[12].mxu1 %v4715_v27 }
 0x760   : > { %8586 = vmatpush3.bf16.msra.mxu0 %v8585_v14  ;;  %8265 = vmatprep.mubr.msk.f32.mxu1 %vm9184_vm2, %v9185_v16  ;;  %v5253_v14 = vand.u32 4294901760, %v5252_v9  ;;  %v5274_v22 = vand.u32 4294901760, %v5273_v44  ;;  %v8627_v30 = vpack.c.bf16 %v5273_v44, %v5266_v12 }
 0x761   : > { %8587 = vmatprep.subr.bf16.mxu0 %v9183_v11 }
 0x762   : > { %v5275_v25 = vsub.f32 %v5273_v44, %v5274_v22  ;;  %v5670_v44 = vld [vmem:[%s9353_s12 + $0x30] sm:$0xff] }
 0x763   : > { %8121 = vmatmul.mubr.f32.vlgmr.msra.gmra.mrb[10].mxu0 %v4715_v27 }
 0x764   : > { %8589 = vmatpush3.bf16.msra.mxu0 %v8588_v15  ;;  %8131 = vmatprep.mubr.msk.f32.mxu0 %vm9184_vm2, %v9185_v16  ;;  %v5260_v15 = vand.u32 4294901760, %v5259_v10 }
 0x765   : > { %8590 = vmatprep.subr.bf16.mxu0 %v9183_v11 }
 0x766   : > { %v8636_v31 = vpack.c.bf16 %v5260_v15, %v5253_v14 }
 0x768   : > { %8592 = vmatpush3.bf16.msra.mxu0 %v8591_v17  ;;  %v5254_v17 = vsub.f32 %v5252_v9, %v5253_v14 }
 0x769   : > { %8599 = vmatprep.subr.bf16.mxu0 %v9183_v11 }
 0x76b   : > { %8132 = vmatmul.mubr.f32.vlgmr.msra.gmra.mrb[12].mxu0 %v4716_v28 }
 0x76c   : > { %8601 = vmatpush3.bf16.msra.mxu0 %v8600_v18  ;;  %8153 = vmatprep.mubr.msk.f32.mxu0 %vm9184_vm2, %v9185_v16  ;;  %v5261_v18 = vsub.f32 %v5259_v10, %v5260_v15  ;;  %v9730_v10 = vsub.f32 %v5668_v4, %v5693_v7  ;;  %v5699_v15 = vand.u32 4294901760, %v5670_v44 }
 0x76d   : > { %8602 = vmatprep.subr.bf16.mxu0 %v9183_v11 }
 0x76e   : > { %v5262_v20 = vand.u32 4294901760, %v5261_v18 }
 0x770   : > { %8604 = vmatpush3.bf16.msra.mxu0 %v8603_v19  ;;  %v5255_v19 = vand.u32 4294901760, %v5254_v17 }
 0x771   : > { %8611 = vmatprep.subr.bf16.mxu0 %v9183_v11 }
 0x772   : > { %v8618_v23 = vpack.c.bf16 %v5262_v20, %v5255_v19  ;;  %v9743_v19 = vsub.f32 %v5670_v44, %v5699_v15 }
 0x773   : > { %8154 = vmatmul.mubr.f32.vlgmr.msra.gmra.mrb[14].mxu0 %v4715_v27  ;;  %v5276_v27 = vand.u32 4294901760, %v5275_v25 }
 0x774   : > { %8175 = vmatprep.mubr.msk.f32.mxu0 %vm9184_vm2, %v9185_v16  ;;  %8613 = vmatpush3.bf16.msra.mxu0 %v9670_v8 }
 0x775   : > { %8614 = vmatprep.subr.bf16.mxu0 %v9183_v11  ;;  %v8621_v28 = vpack.c.bf16 %v5276_v27, %v5269_v26 }
 0x778   : > { %8616 = vmatpush3.bf16.msra.mxu0 %v9673_v13 }
 0x779   : > { %8617 = vmatprep.subr.bf16.mxu0 %v9183_v11 }
 0x82a   : > { %v4969_v32 = vpop.f32.mrb[10].mxu1 }
 0x82b   : > { %v8144_v33 = vpop.f32.mrb[11].mxu1 }
 0x82e   : > { %v4721_v34 = vpop.f32.mrb[8].mxu0 }
 0x82f   : > { %v8111_v35 = vpop.f32.mrb[9].mxu0 }
 0x832   : > { %v5127_v36 = vpop.f32.mrb[12].mxu1 }
 0x833   : > { %v8166_v37 = vpop.f32.mrb[13].mxu1 }
 0x834   : > { %v5157_v37 = vsub.s32 3, %v9386_v46 }
 0x836   : > { %v4812_v38 = vpop.f32.mrb[10].mxu0 }
 0x837   : > { %v4813_v39 = vadd.f32 %v4812_v38, %v4721_v34  ;;  %v8122_v40 = vpop.f32.mrb[11].mxu0 }
 0x83e   : > { %v4892_v41 = vpop.f32.mrb[12].mxu0 }
 0x83f   : > { %v4893_v42 = vadd.f32 %v4892_v41, %v4813_v39  ;;  %v8133_v43 = vpop.f32.mrb[13].mxu0  ;;  %v5158_v41 = vrot.slane %v9657_v51, %v5157_v37  ;;  %v5676_v37 = vld [vmem:[%s9353_s12 + $0x60] sm:$0xff] }
 0x841   : > { %v4970_v45 = vadd.f32 %v4969_v32, %v4893_v42  ;;  %v8639_v32 = vpack.c.bf16 %v5274_v22, %v5267_v21  ;;  %v5672_v21 = vld [vmem:[%s9353_s12 + $0x40] sm:$0xff]  ;;  %v5673_v22 = vld [vmem:[%s9353_s12 + $0x48] sm:$0xff] }
 0x842   : > { %v5705_v24 = vand.u32 4294901760, %v5672_v21  ;;  %v5708_v25 = vand.u32 4294901760, %v5673_v22 }
 0x844   : > { %v9756_v27 = vsub.f32 %v5672_v21, %v5705_v24 }
 0x846   : > { %v5052_v48 = vpop.f32.mrb[14].mxu0 }
 0x847   : > { %v5053_v49 = vadd.f32 %v5052_v48, %v4970_v45  ;;  %v8155_v50 = vpop.f32.mrb[15].mxu0 }
 0x849   : > { %v5128_v1 = vadd.f32 %v5127_v36, %v5053_v49  ;;  %v5152_v36 = vsub.s32 2, %v9386_v46 }
 0x84b   : > { %v5131_v54 = vadd.f32 %v9069_v53, %v5128_v1  ;;  %v5153_v38 = vrot.slane %v9657_v51, %v5152_v36  ;;  %v5665_v53 = vld [vmem:[%s9353_s12 + $0x8] sm:$0xff] }
 0x84d   : > { %v9660_v55 = vadd.f32 %v5135_v52, %v5131_v54  ;;  %v5664_v52 = vld [vmem:[%s9353_s12] sm:$0xff] }
 0x84e   : > { %v5681_v54 = vand.u32 4294901760, %v5664_v52 }
 0x84f   : > { %v5137_v56 = vsel %vm425_vm1, %v9660_v55, 0.0 }
 0x850   : > { %5138 = vadd.xlane.f32.xlu1 %v5137_v56  ;;  %v5684_v56 = vand.u32 4294901760, %v5665_v53 }
 0x852   : > { %v9728_v9 = vpack.c.bf16 %v5684_v56, %v5681_v54 }
 0x854   : > { %8649 = vmatpush3.bf16.msra.mxu1 %v9728_v9 }
 0x855   : > { %8650 = vmatprep.subr.bf16.mxu1 %v9183_v11 }
 0x8dd   : > { %v5139_v57 = vpop.xlane.xlu1 %5138 }
 0x8de   : > { %v5140_v58 = vmul.f32 0.03125, %v5139_v57  ;;  %v9711_v57 = vsub.f32 %v5664_v52, %v5681_v54 }
 0x8e0   : > { %v5141_v59 = vsub.f32 %v9660_v55, %v5140_v58  ;;  %v9713_v58 = vsub.f32 %v5665_v53, %v5684_v56 }
 0x8e2   : > { %v5142_v60 = vmul.f32 %v5141_v59, %v5141_v59 }
 0x8e4   : > { %v5143_v61 = vsel %vm425_vm1, %v5142_v60, 0.0  ;;  %v5667_v60 = vld [vmem:[%s9353_s12 + $0x18] sm:$0xff] }
 0x8e5   : > { %5144 = vadd.xlane.f32.xlu0 %v5143_v61  ;;  %v8696_v61 = vpack.c.bf16 %v9713_v58, %v9711_v57  ;;  %v5690_v0 = vand.u32 4294901760, %v5667_v60 }
 0x8e7   : > { %v9721_v3 = vsub.f32 %v5667_v60, %v5690_v0  ;;  %v5774_v60 = vand.u32 4294901760, %v9711_v57 }
 0x972   : > { %v5145_v33 = vpop.xlane.xlu0 %5144 }
 0x973   : > { %v5146_v34 = vmul.f32 0.03125, %v5145_v33 }
 0x975   : > { %v5147_v35 = vadd.f32 1e-05, %v5146_v34 }
 0x977   : > { %9062 = vrsqrt.f32 %v5147_v35 }
 0x981   : > { %v9063_v39 = vpop.eup %9062 }
 0x982   : > { %v5149_v40 = vmul.f32 %v9063_v39, %v5141_v59  ;;  %v5666_v59 = vld [vmem:[%s9353_s12 + $0x10] sm:$0xff] }
 0x983   : > { %v5687_v62 = vand.u32 4294901760, %v5666_v59 }
 0x984   : > { %v5154_v42 = vmul.f32 %v5153_v38, %v5149_v40  ;;  %v5677_v38 = vld [vmem:[%s9353_s12 + $0x68] sm:$0xff]  ;;  %v5717_v40 = vand.u32 4294901760, %v5676_v37 }
 0x985   : > { %v9719_v2 = vsub.f32 %v5666_v59, %v5687_v62  ;;  %v9741_v18 = vpack.c.bf16 %v5690_v0, %v5687_v62 }
 0x986   : > { %v5159_v43 = vadd.f32 %v5158_v41, %v5154_v42  ;;  %v5720_v41 = vand.u32 4294901760, %v5677_v38  ;;  %v9780_v42 = vpack.c.bf16 %v5708_v25, %v5705_v24 }
 0x987   : > { %v8699_v6 = vpack.c.bf16 %v9721_v3, %v9719_v2  ;;  %8652 = vmatpush3.bf16.msra.mxu1 %v9741_v18  ;;  %v5788_v4 = vand.u32 4294901760, %v9719_v2 }
 0x988   : > { %v5169_v45 = vsel %vm425_vm1, %v5159_v43, 0  ;;  %8653 = vmatprep.subr.bf16.mxu1 %v9183_v11  ;;  %v9782_v43 = vsub.f32 %v5676_v37, %v5717_v40  ;;  %v9804_v59 = vpack.c.bf16 %v5720_v41, %v5717_v40 }
 0x989   : > { %v5240_v47 = vand.u32 4294901760, %v5169_v45 }
 0x98b   : > { %v5241_v48 = vsub.f32 %v5169_v45, %v5240_v47  ;;  %v9784_v45 = vsub.f32 %v5677_v38, %v5720_v41 }
 0x98d   : > { %v5242_v49 = vand.u32 4294901760, %v5241_v48 }
 0x98f   : > { %v5243_v50 = vsub.f32 %v5241_v48, %v5242_v49 }
 0x991   : > { %v5244_v1 = vand.u32 4294901760, %v5243_v50 }
 0x993   : > { %8176 = vmatmul.mubr.f32.vlgmr.msra.gmra.mrb[16].mxu0 %v5244_v1 }
 0x994   : > { %8619 = vmatpush3.bf16.msra.mxu0 %v8618_v23  ;;  %8186 = vmatprep.mubr.msk.f32.mxu0 %vm9184_vm2, %v9185_v16 }
 0x995   : > { %8620 = vmatprep.subr.bf16.mxu0 %v9183_v11 }
 0x998   : > { %8622 = vmatpush3.bf16.msra.mxu0 %v8621_v28  ;;  %v9758_v28 = vsub.f32 %v5673_v22, %v5708_v25  ;;  %v5816_v25 = vand.u32 4294901760, %v9743_v19 }
 0x999   : > { %8623 = vmatprep.subr.bf16.mxu0 %v9183_v11 }
 0x99a   : > { %v5837_v37 = vand.u32 4294901760, %v9758_v28  ;;  %v5817_v38 = vsub.f32 %v9743_v19, %v5816_v25 }
 0x99b   : > { %8187 = vmatmul.mubr.f32.vlgmr.msra.gmra.mrb[16].mxu0 %v5240_v47 }
 0x99c   : > { %8625 = vmatpush3.bf16.msra.mxu0 %v8624_v29  ;;  %8197 = vmatprep.mubr.msk.f32.mxu0 %vm9184_vm2, %v9185_v16  ;;  %v5674_v29 = vld [vmem:[%s9353_s12 + $0x50] sm:$0xff] }
 0x99d   : > { %8626 = vmatprep.subr.bf16.mxu0 %v9183_v11 }
 0x9a0   : > { %8628 = vmatpush3.bf16.msra.mxu0 %v8627_v30  ;;  %v5675_v30 = vld [vmem:[%s9353_s12 + $0x58] sm:$0xff] }
 0x9a1   : > { %8629 = vmatprep.subr.bf16.mxu0 %v9183_v11  ;;  %v5714_v33 = vand.u32 4294901760, %v5675_v30 }
 0x9a3   : > { %8198 = vmatmul.mubr.f32.vlgmr.msra.gmra.mrb[16].mxu0 %v5241_v48  ;;  %v9771_v36 = vsub.f32 %v5675_v30, %v5714_v33  ;;  %v5679_v48 = vld [vmem:[%s9353_s12 + $0x78] sm:$0xff] }
 0x9a4   : > { %8631 = vmatpush3.bf16.msra.mxu0 %v9670_v8  ;;  %8208 = vmatprep.mubr.msk.f32.mxu0 %vm9184_vm2, %v9185_v16  ;;  %v5726_v1 = vand.u32 4294901760, %v5679_v48 }
 0x9a5   : > { %8632 = vmatprep.subr.bf16.mxu0 %v9183_v11 }
 0x9a6   : > { %v9797_v54 = vsub.f32 %v5679_v48, %v5726_v1 }
 0x9a8   : > { %8634 = vmatpush3.bf16.msra.mxu0 %v9673_v13 }
 0x9a9   : > { %8635 = vmatprep.subr.bf16.mxu0 %v9183_v11 }
 0x9ab   : > { %8209 = vmatmul.mubr.f32.vlgmr.msra.gmra.mrb[16].mxu0 %v5242_v49  ;;  %v8714_v49 = vpack.c.bf16 %v9784_v45, %v9782_v43 }
 0x9ac   : > { %8637 = vmatpush3.bf16.msra.mxu0 %v8636_v31  ;;  %8219 = vmatprep.mubr.msk.f32.mxu0 %vm9184_vm2, %v9185_v16  ;;  %v8708_v31 = vpack.c.bf16 %v9758_v28, %v9756_v27 }
 0x9ad   : > { %8638 = vmatprep.subr.bf16.mxu0 %v9183_v11 }
 0x9b0   : > { %8640 = vmatpush3.bf16.msra.mxu0 %v8639_v32  ;;  %v5711_v32 = vand.u32 4294901760, %v5674_v29 }
 0x9b1   : > { %8641 = vmatprep.subr.bf16.mxu0 %v9183_v11 }
 0x9b2   : > { %v9769_v35 = vsub.f32 %v5674_v29, %v5711_v32  ;;  %v9793_v52 = vpack.c.bf16 %v5714_v33, %v5711_v32  ;;  %v5830_v33 = vand.u32 4294901760, %v9756_v27 }
 0x9b3   : > { %8220 = vmatmul.mubr.f32.vlgmr.msra.gmra.mrb[16].mxu0 %v5240_v47 }
 0x9b4   : > { %8643 = vmatpush3.bf16.msra.mxu0 %v9670_v8  ;;  %8230 = vmatprep.mubr.msk.f32.mxu0 %vm9184_vm2, %v9185_v16  ;;  %v5696_v8 = vand.u32 4294901760, %v5669_v5  ;;  %v8711_v39 = vpack.c.bf16 %v9771_v36, %v9769_v35  ;;  %v9845_v41 = vpack.c.bf16 %v5837_v37, %v5830_v33 }
 0x9b5   : > { %8644 = vmatprep.subr.bf16.mxu0 %v9183_v11 }
 0x9b6   : > { %v9732_v12 = vsub.f32 %v5669_v5, %v5696_v8  ;;  %v9754_v26 = vpack.c.bf16 %v5696_v8, %v5693_v7  ;;  %v5795_v5 = vand.u32 4294901760, %v9721_v3 }
 0x9b8   : > { %8646 = vmatpush3.bf16.msra.mxu0 %v9673_v13  ;;  %v5671_v13 = vld [vmem:[%s9353_s12 + $0x38] sm:$0xff]  ;;  %v8702_v14 = vpack.c.bf16 %v9732_v12, %v9730_v10  ;;  %8655 = vmatpush3.bf16.msra.mxu1 %v9754_v26  ;;  %v9820_v8 = vpack.c.bf16 %v5795_v5, %v5788_v4  ;;  %v5796_v21 = vsub.f32 %v9721_v3, %v5795_v5 }
 0x9b9   : > { %8695 = vmatprep.subr.bf16.mxu0 %v9183_v11  ;;  %v5702_v17 = vand.u32 4294901760, %v5671_v13  ;;  %8656 = vmatprep.subr.bf16.mxu1 %v9183_v11 }
 0x9bb   : > { %8231 = vmatmul.mubr.f32.vlgmr.msra.gmra.mrb[16].mxu0 %v5240_v47  ;;  %v9745_v20 = vsub.f32 %v5671_v13, %v5702_v17  ;;  %v9767_v34 = vpack.c.bf16 %v5702_v17, %v5699_v15  ;;  %v5678_v47 = vld [vmem:[%s9353_s12 + $0x70] sm:$0xff]  ;;  %v5809_v15 = vand.u32 4294901760, %v9732_v12  ;;  %v5789_v17 = vsub.f32 %v9719_v2, %v5788_v4 }
 0x9bc   : > { %8335 = vmatprep.mubr.msk.f32.mxu0 %vm9184_vm2, %v9185_v16  ;;  %8697 = vmatpush3.bf16.msra.mxu0 %v8696_v61  ;;  %v5723_v50 = vand.u32 4294901760, %v5678_v47  ;;  %v5781_v61 = vand.u32 4294901760, %v9713_v58 }
 0x9bd   : > { %8698 = vmatprep.subr.bf16.mxu0 %v9183_v11  ;;  %v8705_v23 = vpack.c.bf16 %v9745_v20, %v9743_v19  ;;  %8658 = vmatpush3.bf16.msra.mxu1 %v9767_v34  ;;  %v5823_v29 = vand.u32 4294901760, %v9745_v20 }
 0x9be   : > { %8659 = vmatprep.subr.bf16.mxu1 %v9183_v11  ;;  %v9795_v53 = vsub.f32 %v5678_v47, %v5723_v50  ;;  %v9810_v62 = vpack.c.bf16 %v5781_v61, %v5774_v60  ;;  %v9813_v0 = vpack.c.bf16 %v5726_v1, %v5723_v50  ;;  %v5782_v7 = vsub.f32 %v9713_v58, %v5781_v61 }
 0x9bf   : > { %v5790_v58 = vand.u32 4294901760, %v5789_v17  ;;  %v9837_v32 = vpack.c.bf16 %v5823_v29, %v5816_v25  ;;  %v5818_v47 = vand.u32 4294901760, %v5817_v38  ;;  %v5831_v50 = vsub.f32 %v9756_v27, %v5830_v33 }
 0x9c0   : > { %8700 = vmatpush3.bf16.msra.mxu0 %v8699_v6  ;;  %v8717_v56 = vpack.c.bf16 %v9797_v54, %v9795_v53  ;;  %v5775_v6 = vsub.f32 %v9711_v57, %v5774_v60  ;;  %v5783_v13 = vand.u32 4294901760, %v5782_v7  ;;  %v5838_v1 = vsub.f32 %v9758_v28, %v5837_v37 }
 0x9c1   : > { %8701 = vmatprep.subr.bf16.mxu0 %v9183_v11  ;;  %8661 = vmatpush3.bf16.msra.mxu1 %v9780_v42  ;;  %v5832_v19 = vand.u32 4294901760, %v5831_v50  ;;  %v5858_v60 = vand.u32 4294901760, %v9782_v43  ;;  %v5865_v61 = vand.u32 4294901760, %v9784_v45  ;;  %v5872_v27 = vand.u32 4294901760, %v9795_v53 }
 0x9c2   : > { %8662 = vmatprep.subr.bf16.mxu1 %v9183_v11  ;;  %v5776_v44 = vand.u32 4294901760, %v5775_v6  ;;  %v5879_v28 = vand.u32 4294901760, %v9797_v54 }
 0x9c3   : > { %v8762_v7 = vpack.c.bf16 %v5865_v61, %v5858_v60  ;;  %v5866_v17 = vsub.f32 %v9784_v45, %v5865_v61  ;;  %v6333_v61 = vstv (!%p7453_p6), %s6332_s1 }
 0x9c4   : > { %8703 = vmatpush3.bf16.msra.mxu0 %v8702_v14  ;;  %v5802_v14 = vand.u32 4294901760, %v9730_v10  ;;  %v9827_v22 = vpack.c.bf16 %v5783_v13, %v5776_v44  ;;  %vm6334_vm8 = vcmp.eq.s32.totalorder (!%p7453_p6), %v9525_v63, %v6333_v61 }
 0x9c5   : > { %8704 = vmatprep.subr.bf16.mxu0 %v9183_v11  ;;  %8664 = vmatpush3.bf16.msra.mxu1 %v9793_v52 }
 0x9c6   : > { %8665 = vmatprep.subr.bf16.mxu1 %v9183_v11  ;;  %v9829_v57 = vpack.c.bf16 %v5809_v15, %v5802_v14  ;;  %v5803_v30 = vsub.f32 %v9730_v10, %v5802_v14 }
 0x9c8   : > { %8706 = vmatpush3.bf16.msra.mxu0 %v8705_v23  ;;  %v5797_v23 = vand.u32 4294901760, %v5796_v21  ;;  %v5804_v2 = vand.u32 4294901760, %v5803_v30  ;;  %v8765_v21 = vpack.c.bf16 %v5879_v28, %v5872_v27 }
 0x9c9   : > { %8707 = vmatprep.subr.bf16.mxu0 %v9183_v11  ;;  %8667 = vmatpush3.bf16.msra.mxu1 %v9804_v59 }
 0x9ca   : > { %8668 = vmatprep.subr.bf16.mxu1 %v9183_v11  ;;  %v9831_v24 = vpack.c.bf16 %v5797_v23, %v5790_v58  ;;  %v5867_v23 = vand.u32 4294901760, %v5866_v17 }
 0x9cc   : > { %8709 = vmatpush3.bf16.msra.mxu0 %v8708_v31  ;;  %v5810_v31 = vsub.f32 %v9732_v12, %v5809_v15  ;;  %v5844_v12 = vand.u32 4294901760, %v9769_v35  ;;  %v5859_v15 = vsub.f32 %v9782_v43, %v5858_v60  ;;  %v9201_v60 = vmov (!%p7453_p6), 0.0  }
 0x9cd   : > { %8710 = vmatprep.subr.bf16.mxu0 %v9183_v11  ;;  %8670 = vmatpush3.bf16.msra.mxu1 %v9813_v0 }
 0x9ce   : > { %8671 = vmatprep.subr.bf16.mxu1 %v9183_v11  ;;  %v5811_v3 = vand.u32 4294901760, %v5810_v31  ;;  %v5845_v4 = vsub.f32 %v9769_v35, %v5844_v12  ;;  %v5860_v58 = vand.u32 4294901760, %v5859_v15  ;;  %v5873_v35 = vsub.f32 %v9795_v53, %v5872_v27 }
 0x9d0   : > { %8712 = vmatpush3.bf16.msra.mxu0 %v8711_v39  ;;  %v5824_v39 = vsub.f32 %v9745_v20, %v5823_v29  ;;  %v9843_v40 = vpack.c.bf16 %v5811_v3, %v5804_v2  ;;  %v5839_v20 = vand.u32 4294901760, %v5838_v1  ;;  %v5846_v44 = vand.u32 4294901760, %v5845_v4 }
 0x9d1   : > { %8713 = vmatprep.subr.bf16.mxu0 %v9183_v11  ;;  %v8690_v25 = vpack.c.bf16 %v5867_v23, %v5860_v58  ;;  %v5874_v29 = vand.u32 4294901760, %v5873_v35  ;;  %v5166_v2 = vsub.s32 6, %v9386_v46 }
 0x9d2   : > { %v5825_v10 = vand.u32 4294901760, %v5824_v39  ;;  %v8684_v6 = vpack.c.bf16 %v5839_v20, %v5832_v19 }
 0x9d3   : > { %v5167_v3 = vrot.slane %v9657_v51, %v5166_v2 }
 0x9d4   : > { %8715 = vmatpush3.bf16.msra.mxu0 %v8714_v49  ;;  %v9847_v48 = vpack.c.bf16 %v5825_v10, %v5818_v47  ;;  %v5851_v49 = vand.u32 4294901760, %v9771_v36 }
 0x9d5   : > { %8716 = vmatprep.subr.bf16.mxu0 %v9183_v11 }
 0x9d6   : > { %v5852_v5 = vsub.f32 %v9771_v36, %v5851_v49  ;;  %v5880_v36 = vsub.f32 %v9797_v54, %v5879_v28 }
 0x9d8   : > { %8718 = vmatpush3.bf16.msra.mxu0 %v8717_v56  ;;  %v9853_v56 = vpack.c.bf16 %v5851_v49, %v5844_v12  ;;  %v5853_v13 = vand.u32 4294901760, %v5852_v5  ;;  %v5881_v30 = vand.u32 4294901760, %v5880_v36  ;;  %v7454_v5 = vsel (!%p7453_p6), %vm6334_vm8, 1.0, %v9201_v60 }
 0x9d9   : > { %8743 = vmatprep.subr.bf16.mxu0 %v9183_v11 }
 0x9da   : > { %v8687_v14 = vpack.c.bf16 %v5853_v13, %v5846_v44  ;;  %v8693_v31 = vpack.c.bf16 %v5881_v30, %v5874_v29  ;;  %v6804_v29 = vld [vmem:[%s10078_s8] sm:$0xff] (!%p7453_p6)  ;;  %v6805_v30 = vld [vmem:[%s10078_s8 + $0x8] sm:$0xff] (!%p7453_p6) }
 0x9db   : > { %v6815_v2 = vand.u32 (!%p7453_p6), 4294901760, %v6805_v30 }
 0xa8e   : > { %v5652_v33 = vpop.f32.mrb[16].mxu0 }
 0xa8f   : > { %v8832_v37 = vadd.f32 %v5652_v33, %v5167_v3  ;;  %v8232_v43 = vpop.f32.mrb[17].mxu0  ;;  %v6899_v33 = vsub.f32 (!%p7453_p6), %v6805_v30, %v6815_v2 }
 0xa90   : > { %v6807_v43 = vld [vmem:[%s10078_s8 + $0x18] sm:$0xff] (!%p7453_p6) }
 0xa91   : > { %v7452_v38 = vmul.f32 -1.702, %v8832_v37 }
 0xa93   : > { %v5658_v45 = vmul.f32 1.442695, %v7452_v38 }
 0xa95   : > { %9064 = vpow2.f32 %v5658_v45  ;;  %v9203_v45 = vmov (!%p7453_p6), 0.0|0.0  }
 0xa9f   : > { %v9065_v39 = vpop.eup %9064 }
 0xaa0   : > { %v5660_v47 = vadd.f32 1.0, %v9065_v39 }
 0xaa2   : > { %9066 = vrcp.f32 %v5660_v47  ;;  %v6821_v47 = vand.u32 (!%p7453_p6), 4294901760, %v6807_v43 }
 0xaac   : > { %v9067_v53 = vpop.eup %9066 }
 0xaad   : > { %v5663_v10 = vmul.f32 %v9067_v53, %v8832_v37  ;;  %v6806_v37 = vld [vmem:[%s10078_s8 + $0x10] sm:$0xff] (!%p7453_p6) }
 0xaae   : > { %v6818_v39 = vand.u32 (!%p7453_p6), 4294901760, %v6806_v37 }
 0xaaf   : > { %v9867_v54 = vand.u32 4294901760, %v5663_v10 }
 0xab1   : > { %v5762_v12 = vsub.f32 %v5663_v10, %v9867_v54  ;;  %v6906_v10 = vsub.f32 (!%p7453_p6), %v6806_v37, %v6818_v39 }
 0xab3   : > { %v5763_v49 = vand.u32 4294901760, %v5762_v12  ;;  %8336 = vmatmul.mubr.f32.vlgmr.msra.gmra.mrb[18].mxu0 %v5762_v12 }
 0xab4   : > { %8745 = vmatpush3.bf16.msra.mxu0 %v9810_v62  ;;  %8405 = vmatprep.mubr.msk.f32.mxu0 %vm9184_vm2, %v9185_v16 }
 0xab5   : > { %8746 = vmatprep.subr.bf16.mxu0 %v9183_v11  ;;  %v5764_v50 = vsub.f32 %v5762_v12, %v5763_v49 }
 0xab7   : > { %v5765_v1 = vand.u32 4294901760, %v5764_v50  ;;  %v6900_v50 = vand.u32 (!%p7453_p6), 4294901760, %v6899_v33 }
 0xab8   : > { %8748 = vmatpush3.bf16.msra.mxu0 %v9820_v8 }
 0xab9   : > { %8266 = vmatmul.mubr.f32.vlgmr.msra.gmra.mrb[14].mxu1 %v5765_v1  ;;  %8749 = vmatprep.subr.bf16.mxu0 %v9183_v11  ;;  %v8795_v1 = vpack.c.bf16 (!%p7453_p6), %v6821_v47, %v6818_v39 }
 0xaba   : > { %8673 = vmatpush3.bf16.msra.mxu1 %v9827_v22  ;;  %8300 = vmatprep.mubr.msk.f32.mxu1 %vm9184_vm2, %v9185_v16 }
 0xabb   : > { %8674 = vmatprep.subr.bf16.mxu1 %v9183_v11 }
 0xabc   : > { %8751 = vmatpush3.bf16.msra.mxu0 %v9829_v57 }
 0xabd   : > { %8752 = vmatprep.subr.bf16.mxu0 %v9183_v11 }
 0xabe   : > { %8676 = vmatpush3.bf16.msra.mxu1 %v9831_v24 }
 0xabf   : > { %8677 = vmatprep.subr.bf16.mxu1 %v9183_v11 }
 0xac0   : > { %8754 = vmatpush3.bf16.msra.mxu0 %v9837_v32 }
 0xac1   : > { %8755 = vmatprep.subr.bf16.mxu0 %v9183_v11 }
 0xac2   : > { %8679 = vmatpush3.bf16.msra.mxu1 %v9843_v40 }
 0xac3   : > { %8680 = vmatprep.subr.bf16.mxu1 %v9183_v11 }
 0xac4   : > { %8757 = vmatpush3.bf16.msra.mxu0 %v9845_v41 }
 0xac5   : > { %8758 = vmatprep.subr.bf16.mxu0 %v9183_v11 }
 0xac6   : > { %8682 = vmatpush3.bf16.msra.mxu1 %v9847_v48 }
 0xac7   : > { %8683 = vmatprep.subr.bf16.mxu1 %v9183_v11 }
 0xac8   : > { %8760 = vmatpush3.bf16.msra.mxu0 %v9853_v56 }
 0xac9   : > { %8761 = vmatprep.subr.bf16.mxu0 %v9183_v11 }
 0xaca   : > { %8685 = vmatpush3.bf16.msra.mxu1 %v8684_v6  ;;  %v6338_v6 = vsel (!%p7453_p6), %vm956_vm3, %v7454_v5, 0 }
 0xacb   : > { %8686 = vmatprep.subr.bf16.mxu1 %v9183_v11 }
 0xacc   : > { %8763 = vmatpush3.bf16.msra.mxu0 %v8762_v7  ;;  %v6407_v7 = vsub.f32 (!%p7453_p6), %v6338_v6, %v6338_v6 }
 0xacd   : > { %8764 = vmatprep.subr.bf16.mxu0 %v9183_v11 }
 0xace   : > { %8688 = vmatpush3.bf16.msra.mxu1 %v8687_v14  ;;  %v6408_v44 = vand.u32 (!%p7453_p6), 4294901760, %v6407_v7 }
 0xacf   : > { %8689 = vmatprep.subr.bf16.mxu1 %v9183_v11 }
 0xad0   : > { %8766 = vmatpush3.bf16.msra.mxu0 %v8765_v21  ;;  %v6409_v13 = vsub.f32 (!%p7453_p6), %v6407_v7, %v6408_v44 }
 0xad1   : > { %8448 = vmatprep.subr.mxu0 (!%p7453_p6), %v9201_v60 }
 0xad2   : > { %8691 = vmatpush3.bf16.msra.mxu1 %v8690_v25  ;;  %v6410_v63 = vand.u32 (!%p7453_p6), 4294901760, %v6409_v13 }
 0xad3   : > { %8406 = vmatmul.mubr.f32.vlgmr.msra.gmra.mrb[20].mxu0 %v9867_v54  ;;  %8692 = vmatprep.subr.bf16.mxu1 %v9183_v11 }
 0xad4   : > { %8450 = vmatprep.mubr.msk.f32.mxu0 (!%p7453_p6), %vm9202_vm7, %v9201_v60 }
 0xad6   : > { %8694 = vmatpush3.bf16.msra.mxu1 %v8693_v31  ;;  %v6812_v31 = vand.u32 (!%p7453_p6), 4294901760, %v6804_v29 }
 0xad7   : > { %8719 = vmatprep.subr.bf16.mxu1 %v9183_v11 }
 0xad8   : > { %v6892_v3 = vsub.f32 (!%p7453_p6), %v6804_v29, %v6812_v31  ;;  %v9983_v38 = vpack.c.bf16 (!%p7453_p6), %v6815_v2, %v6812_v31 }
 0xad9   : > { %8301 = vmatmul.mubr.f32.vlgmr.msra.gmra.mrb[16].mxu1 %v9867_v54 }
 0xada   : > { %8721 = vmatpush3.bf16.msra.mxu1 %v9728_v9  ;;  %8370 = vmatprep.mubr.msk.f32.mxu1 %vm9184_vm2, %v9185_v16  ;;  %v8804_v53 = vpack.c.bf16 (!%p7453_p6), %v6899_v33, %v6892_v3 }
 0xadb   : > { %8722 = vmatprep.subr.bf16.mxu1 %v9183_v11 }
 0xade   : > { %8724 = vmatpush3.bf16.msra.mxu1 %v9741_v18 }
 0xadf   : > { %8725 = vmatprep.subr.bf16.mxu1 %v9183_v11 }
 0xae2   : > { %8727 = vmatpush3.bf16.msra.mxu1 %v9754_v26 }
 0xae3   : > { %8728 = vmatprep.subr.bf16.mxu1 %v9183_v11 }
 0xae6   : > { %8730 = vmatpush3.bf16.msra.mxu1 %v9767_v34 }
 0xae7   : > { %8731 = vmatprep.subr.bf16.mxu1 %v9183_v11 }
 0xaea   : > { %8733 = vmatpush3.bf16.msra.mxu1 %v9780_v42 }
 0xaeb   : > { %8734 = vmatprep.subr.bf16.mxu1 %v9183_v11 }
 0xaee   : > { %8736 = vmatpush3.bf16.msra.mxu1 %v9793_v52 }
 0xaef   : > { %8737 = vmatprep.subr.bf16.mxu1 %v9183_v11 }
 0xaf2   : > { %8739 = vmatpush3.bf16.msra.mxu1 %v9804_v59 }
 0xaf3   : > { %8740 = vmatprep.subr.bf16.mxu1 %v9183_v11 }
 0xaf6   : > { %8742 = vmatpush3.bf16.msra.mxu1 %v9813_v0 }
 0xaf7   : > { %8767 = vmatprep.subr.bf16.mxu1 %v9183_v11 }
 0xaf9   : > { %8371 = vmatmul.mubr.f32.vlgmr.msra.gmra.mrb[18].mxu1 %v5763_v49  ;;  %v6893_v49 = vand.u32 (!%p7453_p6), 4294901760, %v6892_v3 }
 0xafa   : > { %8769 = vmatpush3.bf16.msra.mxu1 %v9728_v9  ;;  %8440 = vmatprep.mubr.msk.f32.mxu1 %vm9184_vm2, %v9185_v16 }
 0xafb   : > { %8770 = vmatprep.subr.bf16.mxu1 %v9183_v11 }
 0xafe   : > { %8772 = vmatpush3.bf16.msra.mxu1 %v9741_v18 }
 0xaff   : > { %8773 = vmatprep.subr.bf16.mxu1 %v9183_v11 }
 0xb02   : > { %8775 = vmatpush3.bf16.msra.mxu1 %v9754_v26 }
 0xb03   : > { %8776 = vmatprep.subr.bf16.mxu1 %v9183_v11 }
 0xb06   : > { %8778 = vmatpush3.bf16.msra.mxu1 %v9767_v34 }
 0xb07   : > { %8779 = vmatprep.subr.bf16.mxu1 %v9183_v11 }
 0xb0a   : > { %8781 = vmatpush3.bf16.msra.mxu1 %v9780_v42 }
 0xb0b   : > { %8782 = vmatprep.subr.bf16.mxu1 %v9183_v11 }
 0xb0e   : > { %8784 = vmatpush3.bf16.msra.mxu1 %v9793_v52 }
 0xb0f   : > { %8785 = vmatprep.subr.bf16.mxu1 %v9183_v11 }
 0xb12   : > { %8787 = vmatpush3.bf16.msra.mxu1 %v9804_v59 }
 0xb13   : > { %8788 = vmatprep.subr.bf16.mxu1 %v9183_v11  ;;  %v6324_v11 = vsub.s32 5, %v9386_v46 }
 0xb15   : > { %v6325_v41 = vrot.slane %v9657_v51, %v6324_v11 }
 0xb16   : > { %8790 = vmatpush3.bf16.msra.mxu1 %v9813_v0 }
 0xb17   : > { %8443 = vmatprep.subr.mxu1 (!%p7453_p6), %v9201_v60 }
 0xb19   : > { %8441 = vmatmul.mubr.f32.vlgmr.msra.gmra.mrb[20].mxu1 %v9867_v54  ;;  %v6913_v54 = vsub.f32 (!%p7453_p6), %v6807_v43, %v6821_v47 }
 0xb1a   : > { %8445 = vmatprep.mubr.msk.f32.mxu1 (!%p7453_p6), %vm9202_vm7, %v9201_v60 }
 0xb1b   : > { %v8807_v12 = vpack.c.bf16 (!%p7453_p6), %v6913_v54, %v6906_v10 }
 0xb86   : > { %v6022_v16 = vpop.f32.mrb[18].mxu0 }
 0xb87   : > { %v8337_v9 = vpop.f32.mrb[19].mxu0 }
 0xb88   : > { %v6901_v9 = vsub.f32 (!%p7453_p6), %v6899_v33, %v6900_v50 }
 0xb8c   : > { %v5767_v18 = vpop.f32.mrb[14].mxu1 }
 0xb8d   : > { %v8267_v26 = vpop.f32.mrb[15].mxu1 }
 0xb8e   : > { %v6902_v26 = vand.u32 (!%p7453_p6), 4294901760, %v6901_v9 }
 0xba6   : > { %v6230_v34 = vpop.f32.mrb[20].mxu0 }
 0xba7   : > { %v8407_v42 = vpop.f32.mrb[21].mxu0 }
 0xba8   : > { %v6914_v42 = vand.u32 (!%p7453_p6), 4294901760, %v6913_v54 }
 0xbac   : > { %v5918_v62 = vpop.f32.mrb[16].mxu1 }
 0xbad   : > { %v5919_v8 = vadd.f32 %v5918_v62, %v5767_v18  ;;  %v8302_v22 = vpop.f32.mrb[17].mxu1 }
 0xbae   : > { %v6915_v22 = vsub.f32 (!%p7453_p6), %v6913_v54, %v6914_v42 }
 0xbaf   : > { %v6023_v52 = vadd.f32 %v6022_v16, %v5919_v8  ;;  %v6894_v16 = vsub.f32 (!%p7453_p6), %v6892_v3, %v6893_v49 }
 0xbb1   : > { %v6895_v18 = vand.u32 (!%p7453_p6), 4294901760, %v6894_v16 }
 0xbb3   : > { %v8798_v62 = vpack.c.bf16 (!%p7453_p6), %v6902_v26, %v6895_v18 }
 0xbcc   : > { %v6111_v57 = vpop.f32.mrb[18].mxu1 }
 0xbcd   : > { %v6112_v24 = vadd.f32 %v6111_v57, %v6023_v52  ;;  %v8372_v32 = vpop.f32.mrb[19].mxu1  ;;  %v8816_v52 = vpack.c.bf16 (!%p7453_p6), %v6900_v50, %v6893_v49 }
 0xbcf   : > { %v6231_v59 = vadd.f32 %v6230_v34, %v6112_v24  ;;  %v6907_v34 = vand.u32 (!%p7453_p6), 4294901760, %v6906_v10  ;;  %v6916_v24 = vand.u32 (!%p7453_p6), 4294901760, %v6915_v22 }
 0xbd1   : > { %v6908_v8 = vsub.f32 (!%p7453_p6), %v6906_v10, %v6907_v34 }
 0xbd3   : > { %v6909_v57 = vand.u32 (!%p7453_p6), 4294901760, %v6908_v8 }
 0xbd5   : > { %v8801_v32 = vpack.c.bf16 (!%p7453_p6), %v6916_v24, %v6909_v57 }
 0xbec   : > { %v6317_v40 = vpop.f32.mrb[20].mxu1 }
 0xbed   : > { %v6318_v0 = vadd.f32 %v6317_v40, %v6231_v59  ;;  %v8442_v48 = vpop.f32.mrb[21].mxu1  ;;  %6331 = sbr.rel (%p7453_p6) target bundleno = 3873 (0xf21), region = 60  ;;  %v8819_v59 = vpack.c.bf16 (!%p7453_p6), %v6914_v42, %v6907_v34 }
 0xbee   : > { %v6786_v48 = vld [vmem:[%s10077_s7] sm:$0x1] (!%p7453_p6) }
 0xbef   : > { %v6321_v56 = vadd.f32 %v6318_v0, %v9660_v55 }
 0xbf1   : > { %v6326_v19 = vadd.f32 %v6325_v41, %v6321_v56 }
 0xbf3   : > { %6327 = vst.msk [vmem:[#allocation2] sm:$0xff] %vm425_vm1, %v6326_v19  ;;  %v6341_v20 = vand.u32 (!%p7453_p6), 4294901760, %v6326_v19 }
 0xbf5   : > { %v6418_v46 = vsub.f32 %v6326_v19, %v6341_v20  ;;  %8444 = vmatpush3.msra.mxu1 %v6341_v20  ;;  %v6787_v19 = vld [vmem:[%s10077_s7 + $0x1] sm:$0x1] }
 0xbf6   : > { %8446 = vmatmul.mubr.f32.vlgmr.msra.gmra.mrb[0].mxu1 %v6410_v63  ;;  %8803 = vmatprep.subr.bf16.mxu1 %v9203_v45 }
 0xbf7   : > { %v6419_v51 = vand.u32 4294901760, %v6418_v46  ;;  %8503 = vmatprep.mubr.msk.f32.mxu1 %vm9202_vm7, %v9201_v60  ;;  %8805 = vmatpush3.bf16.msra.mxu1 %v8804_v53 }
 0xbf8   : > { %8806 = vmatprep.subr.bf16.mxu1 %v9203_v45 }
 0xbf9   : > { %v6420_v55 = vsub.f32 %v6418_v46, %v6419_v51 }
 0xbfb   : > { %v6421_v4 = vand.u32 4294901760, %v6420_v55  ;;  %8808 = vmatpush3.bf16.msra.mxu1 %v8807_v12 }
 0xbfc   : > { %8809 = vmatprep.subr.bf16.mxu1 %v9203_v45 }
 0xbfd   : > { %8449 = vmatpush3.msra.mxu0 %v6421_v4 }
 0xbfe   : > { %8451 = vmatmul.mubr.msk.f32.vlgmr.msra.gmra.mrb[0].mxu0 %vm956_vm3, %v7454_v5  ;;  %8453 = vmatprep.subr.mxu0 %v9201_v60 }
 0xbff   : > { %8454 = vmatpush3.msra.mxu0 %v6418_v46  ;;  %8455 = vmatprep.mubr.msk.f32.mxu0 %vm9202_vm7, %v9201_v60 }
 0xc00   : > { %8458 = vmatprep.subr.mxu0 %v9201_v60 }
 0xc06   : > { %8456 = vmatmul.mubr.f32.vlgmr.msra.gmra.mrb[0].mxu0 %v6407_v7 }
 0xc07   : > { %8459 = vmatpush3.msra.mxu0 %v6341_v20  ;;  %8460 = vmatprep.mubr.msk.f32.mxu0 %vm9202_vm7, %v9201_v60 }
 0xc08   : > { %8463 = vmatprep.subr.mxu0 %v9201_v60 }
 0xc0e   : > { %8461 = vmatmul.mubr.f32.vlgmr.msra.gmra.mrb[0].mxu0 %v6408_v44 }
 0xc0f   : > { %8464 = vmatpush3.msra.mxu0 %v6419_v51  ;;  %8465 = vmatprep.mubr.msk.f32.mxu0 %vm9202_vm7, %v9201_v60 }
 0xc10   : > { %8468 = vmatprep.subr.mxu0 %v9201_v60 }
 0xc16   : > { %8466 = vmatmul.mubr.msk.f32.vlgmr.msra.gmra.mrb[0].mxu0 %vm956_vm3, %v7454_v5 }
 0xc17   : > { %8469 = vmatpush3.msra.mxu0 %v6341_v20  ;;  %8470 = vmatprep.mubr.msk.f32.mxu0 %vm9202_vm7, %v9201_v60 }
 0xc18   : > { %8791 = vmatprep.subr.bf16.mxu0 %v9203_v45 }
 0xc1e   : > { %8471 = vmatmul.mubr.msk.f32.vlgmr.msra.gmra.mrb[0].mxu0 %vm956_vm3, %v7454_v5 }
 0xc1f   : > { %8481 = vmatprep.mubr.msk.f32.mxu0 %vm9202_vm7, %v9201_v60  ;;  %8793 = vmatpush3.bf16.msra.mxu0 %v9983_v38 }
 0xc20   : > { %8794 = vmatprep.subr.bf16.mxu0 %v9203_v45 }
 0xc23   : > { %8796 = vmatpush3.bf16.msra.mxu0 %v8795_v1 }
 0xc24   : > { %8797 = vmatprep.subr.bf16.mxu0 %v9203_v45 }
 0xcc9   : > { %v6412_v14 = vpop.f32.mrb[0].mxu1 }
 0xcca   : > { %v8447_v27 = vpop.f32.mrb[1].mxu1 }
 0xcf1   : > { %v6782_v28 = vpop.f32.mrb[0].mxu0 }
 0xcf2   : > { %v8933_v15 = vadd.f32 %v6782_v28, %v6412_v14  ;;  %v8472_v17 = vpop.f32.mrb[1].mxu0 }
 0xcf4   : > { %v6789_v21 = vsel %vm6788_vm9, %v8933_v15, 0.0 }
 0xcf5   : > { %6790 = vadd.xlane.f32.xlu0 %v6789_v21 }
 0xd82   : > { %v6791_v58 = vpop.xlane.xlu0 %6790 }
 0xd83   : > { %v6792_v23 = vmul.f32 0.03125, %v6791_v58 }
 0xd85   : > { %v6793_v35 = vsub.f32 %v8933_v15, %v6792_v23 }
 0xd87   : > { %v6794_v36 = vmul.f32 %v6793_v35, %v6793_v35 }
 0xd89   : > { %v6795_v25 = vsel %vm6788_vm9, %v6794_v36, 0.0 }
 0xd8a   : > { %6796 = vadd.xlane.f32.xlu0 %v6795_v25 }
 0xe17   : > { %v6797_v11 = vpop.xlane.xlu0 %6796 }
 0xe18   : > { %v6798_v40 = vmul.f32 0.03125, %v6797_v11 }
 0xe1a   : > { %v6799_v0 = vadd.f32 1e-05, %v6798_v40 }
 0xe1c   : > { %9070 = vrsqrt.f32 %v6799_v0 }
 0xe26   : > { %v9071_v41 = vpop.eup %9070 }
 0xe27   : > { %v6801_v56 = vmul.f32 %v9071_v41, %v6793_v35 }
 0xe29   : > { %v6802_v20 = vmul.f32 %v6801_v56, %v6786_v48 }
 0xe2b   : > { %v6803_v46 = vadd.f32 %v6802_v20, %v6787_v19 }
 0xe2d   : > { %v6809_v51 = vsel %vm425_vm1, %v6803_v46, 0 }
 0xe2e   : > { %v6880_v55 = vand.u32 4294901760, %v6809_v51 }
 0xe30   : > { %v6881_v61 = vsub.f32 %v6809_v51, %v6880_v55 }
 0xe32   : > { %8504 = vmatmul.mubr.f32.vlgmr.msra.gmra.mrb[2].mxu1 %v6881_v61  ;;  %v6882_v4 = vand.u32 4294901760, %v6881_v61 }
 0xe33   : > { %8811 = vmatpush3.bf16.msra.mxu1 %v9983_v38  ;;  %8514 = vmatprep.mubr.msk.f32.mxu1 %vm9202_vm7, %v9201_v60 }
 0xe34   : > { %8812 = vmatprep.subr.bf16.mxu1 %v9203_v45  ;;  %v6883_v5 = vsub.f32 %v6881_v61, %v6882_v4 }
 0xe36   : > { %v6884_v6 = vand.u32 4294901760, %v6883_v5 }
 0xe37   : > { %8814 = vmatpush3.bf16.msra.mxu1 %v8795_v1 }
 0xe38   : > { %8482 = vmatmul.mubr.f32.vlgmr.msra.gmra.mrb[2].mxu0 %v6884_v6  ;;  %8815 = vmatprep.subr.bf16.mxu1 %v9203_v45 }
 0xe39   : > { %8799 = vmatpush3.bf16.msra.mxu0 %v8798_v62  ;;  %8492 = vmatprep.mubr.msk.f32.mxu0 %vm9202_vm7, %v9201_v60 }
 0xe3a   : > { %8515 = vmatmul.mubr.f32.vlgmr.msra.gmra.mrb[2].mxu1 %v6882_v4  ;;  %8800 = vmatprep.subr.bf16.mxu0 %v9203_v45 }
 0xe3b   : > { %8817 = vmatpush3.bf16.msra.mxu1 %v8816_v52  ;;  %8525 = vmatprep.mubr.msk.f32.mxu1 %vm9202_vm7, %v9201_v60 }
 0xe3c   : > { %8818 = vmatprep.subr.bf16.mxu1 %v9203_v45 }
 0xe3d   : > { %8802 = vmatpush3.bf16.msra.mxu0 %v8801_v32 }
 0xe3f   : > { %8820 = vmatpush3.bf16.msra.mxu1 %v8819_v59 }
 0xe40   : > { %8493 = vmatmul.mubr.f32.vlgmr.msra.gmra.mrb[2].mxu0 %v6880_v55  ;;  %8821 = vmatprep.subr.bf16.mxu1 %v9203_v45 }
 0xe42   : > { %8526 = vmatmul.mubr.f32.vlgmr.msra.gmra.mrb[2].mxu1 %v6880_v55 }
 0xe43   : > { %8823 = vmatpush3.bf16.msra.mxu1 %v9983_v38  ;;  %8536 = vmatprep.mubr.msk.f32.mxu1 %vm9202_vm7, %v9201_v60 }
 0xe44   : > { %8824 = vmatprep.subr.bf16.mxu1 %v9203_v45 }
 0xe47   : > { %8826 = vmatpush3.bf16.msra.mxu1 %v8795_v1 }
 0xe4a   : > { %8537 = vmatmul.mubr.f32.vlgmr.msra.gmra.mrb[2].mxu1 %v6880_v55 }
 0xf13   : > { %v6977_v7 = vpop.f32.mrb[2].mxu0 }
 0xf14   : > { %v8494_v44 = vpop.f32.mrb[3].mxu0 }
 0xf1d   : > { %v7292_v13 = vpop.f32.mrb[2].mxu1 }
 0xf1e   : > { %v8934_v63 = vadd.f32 %v7292_v13, %v6977_v7  ;;  %v8538_v14 = vpop.f32.mrb[3].mxu1 }
 0xf20   : > { %7296 = vst [vmem:[%s9362_s19] sm:$0x1] %v8934_v63 }
 0xf21 PF: > { %s7458_s21 = sshll.u32 %s9168_s17, 4  ;;  %s7310_s29 = sshll.u32 %s9362_s19, 4  ;;  %s7311_s29 = int_to_ptr.vmem [resolvable:$true] %s7310_s29 }
 0xf22   : > { %s10020_s18 = scalar_lea.hbm %s10079_s9, %s7458_s21  ;;  %s10099_s1 = sand.u32 1, %s9156_s15  }
 0xf23   : > { %s7298_s16 = scalar_lea.sflag [#allocation6], %s10099_s1  ;;  %s9084_s26 = scalar_lea.vmem %s7311_s29, 16 }
 0xf24   : > { %p9085_p7 = scmp.ne.s32.totalorder %s7311_s29, %s9084_s26  ;;  %s9204_s12 = smov [#allocation5]  }
 0xf25   : > { %s9088_s14 = sshll.u32 %s9204_s12, 4  ;;  %s9089_s14 = int_to_ptr.vmem [resolvable:$false] %s9088_s14 }
 0xf26   : > { %p9086_p9 = pnand %p9085_p7, %p9307_p8  ;;  %s9090_s0 = scalar_lea.vmem %s9089_s14, 32 }
 0xf27   : > { %p9091_p11 = scmp.lt.s32.totalorder %s7311_s29, %s9089_s14  ;;  %p9092_p12 = scmp.lt.s32.totalorder %s9090_s0, %s9084_s26 }
 0xf28   : > { %p9087_p10 = pneg %p9086_p9 }
 0xf29   : > { %p9093_p13 = por %p9092_p12, %p9091_p11 }
 0xf2b   : > { %p9094_p1 = pnand %p9093_p13, %p9087_p10 }
 0xf2d   : > { %9097 = shalt.err (!%p9094_p1)
}
 0xf2e   : > { %s9098_s17 = scalar_lea.hbm %s10020_s18, 16  ;;  %s9102_s30 = scalar_lea.hbm %s10079_s9, 32 }
 0xf2f   : > { %p9099_p2 = scmp.ne.s32.totalorder %s10020_s18, %s9098_s17  ;;  %p9103_p5 = scmp.lt.u32.totalorder %s10020_s18, %s10079_s9 }
 0xf30   : > { %p9104_p6 = scmp.lt.u32.totalorder %s9102_s30, %s9098_s17  ;;  %p9106_p9 = scmp.lt.u32.totalorder %s9098_s17, %s10020_s18 }
 0xf31   : > { %p9100_p3 = pnand %p9099_p2, %p9307_p8 }
 0xf32   : > { %p9105_p7 = por %p9104_p6, %p9103_p5 }
 0xf33   : > { %p9101_p4 = pneg %p9100_p3 }
 0xf34   : > { %p9107_p10 = por %p9106_p9, %p9105_p7 }
 0xf36   : > { %p9108_p11 = pnand %p9107_p10, %p9101_p4 }
 0xf38   : > { %9111 = shalt.err (!%p9108_p11)
}
 0xf39   : > { %8951 = dma.vmem_to_hbm [thread:$0]  (%p9307_p8), %s7311_s29, 16, %s10020_s18, %s7298_s16  }
 0xf3a PF: > { %s10100_s27 = sld [smem:[#allocation9_spill]]  ;;  %p8957_p12 = scmp.ge.s32.totalorder %s9180_s20, 2 }
 0xf3c   : > { %p8954_p13 = pnand %p8957_p12, %p9317_p0 }
 0xf40   : > { %s7322_s13 = sand.u32 1, %s10100_s27  }
 0xf41   : > { %s7323_s21 = scalar_lea.sflag [#allocation6], %s7322_s13 }
 0xf42   : > { %9147 = dma.done.wait (!%p8954_p13), %s7323_s21, 16  }
 0xf43   : > { %9149 = vsyncadd (!%p8954_p13), %s7323_s21, 4294967280  ;;  %s28_s20 = sadd.s32 1, %s9180_s20   ;;  %s10102_s24 = sld [smem:[#allocation10_spill]] }
 0xf44   : > { %p25_p1 = scmp.ge.s32.totalorder %s28_s20, 6   ;;  %s10103_s0 = sld [smem:[#allocation16_spill]] }
 0xf45   : > { %s10104_s16 = sld [smem:[#allocation11_spill]]  ;;  %s10105_s17 = sld [smem:[#allocation12_spill]] }
 0xf46   : > { %s10106_s18 = sld [smem:[#allocation13_spill]]  ;;  %s10107_s19 = sld [smem:[#allocation14_spill]] }
 0xf47   : > { %s10108_s14 = smov %s9156_s15  ;;  %27 = sbr.rel (!%p25_p1) target bundleno = 20 (0x14), region = 110 }
 0xf49   : > { %s10109_s15 = smov %s10102_s24 }
 0xf4e   :  { %7327 = vsyncpa [#allocation6], 1 }
 0xf4f   :  { %7329 = vsyncpa [#allocation6 + $0x1], 1 }

</bundles_post_ra>
